<compile_context>
chip_gen: v6e
topology: v6e:2x2x1
jax: 0.10.0
libtpu: 0.0.40
codegen_flags: <defaults>
</compile_context>

<pallas_src>
import functools
import math

import jax
import jax.numpy as jnp
from jax.experimental import pallas as pl
from jax.experimental.pallas import tpu as pltpu

EPS = 1e-6  # LayerNormalization epsilon (added to std, not variance -- torch code)


# ---------------------------------------------------------------------------
# Fused decoder-block kernel (one grid step == one batch element)
# ---------------------------------------------------------------------------
def _decoder_block_kernel(n_heads, fast,
                          x_ref, enc_ref, tmask_ref, smask_ref,
                          ln0_a, ln0_b,
                          sa_wq, sa_bq, sa_wk, sa_bk, sa_wv, sa_bv, sa_wo, sa_bo,
                          ln1_a, ln1_b,
                          ca_wq, ca_bq, ca_wk, ca_bk, ca_wv, ca_bv, ca_wo, ca_bo,
                          ln2_a, ln2_b,
                          ff_w1, ff_b1, ff_w2, ff_b2,
                          o_ref):
    cdt = jnp.bfloat16 if fast else jnp.float32

    def recip(v):
        # approx -> EUP slot (otherwise-idle); exact divide in verification mode.
        return pl.reciprocal(v, approx=True) if fast else 1.0 / v

    def layernorm(h, a_ref, b_ref):
        # Torch-style: unbiased std (d-1), eps added to std (not variance).
        d = h.shape[-1]
        mean = jnp.mean(h, axis=-1, keepdims=True)
        diff = h - mean
        var = jnp.sum(diff * diff, axis=-1, keepdims=True) * (1.0 / (d - 1))
        inv = recip(jnp.sqrt(var) + EPS)
        return a_ref[0] * (diff * inv) + b_ref[0]

    def proj(h, w_ref, b_ref):
        # bf16 (or f32) operands, f32 accumulation.
        return (jnp.dot(h.astype(cdt), w_ref[...],
                        preferred_element_type=jnp.float32) + b_ref[0])

    def mha(x_ln, kv, bias, wq, bq, wk, bk, wv, bv, wo, bo):
        sq, d_model = x_ln.shape
        sk = kv.shape[0]
        dk = d_model // n_heads
        scale = 1.0 / math.sqrt(dk)

        q = proj(x_ln, wq, bq) * scale           # fold 1/sqrt(dk) into q (cheaper)
        k = proj(kv, wk, bk)
        v = proj(kv, wv, bv)

        # heads -> leading batch dim; transposes keep the minor (lane) dim fixed.
        q3 = jnp.transpose(q.reshape(sq, n_heads, dk), (1, 0, 2)).astype(cdt)
        k3 = jnp.transpose(k.reshape(sk, n_heads, dk), (1, 0, 2)).astype(cdt)
        v3 = jnp.transpose(v.reshape(sk, n_heads, dk), (1, 0, 2)).astype(cdt)

        # One batched contraction for all heads.
        scores = jnp.einsum('hqd,hkd->hqk', q3, k3,
                            preferred_element_type=jnp.float32)
        scores = scores + bias[None, :, :]       # additive mask bias (computed once)
        # NOTE: a fully-masked row gives a softmax over the (equally huge)
        # -1e9-shifted scores rather than torch's exactly-uniform row; identical
        # whenever at least one position is unmasked (as in this module's use).

        m = jnp.max(scores, axis=-1, keepdims=True)
        e = jnp.exp(scores - m)
        probs = e * recip(jnp.sum(e, axis=-1, keepdims=True))   # dropout(p=0) == id

        ctx = jnp.einsum('hqk,hkd->hqd', probs.astype(cdt), v3,
                         preferred_element_type=jnp.float32)
        ctx = jnp.transpose(ctx, (1, 0, 2)).reshape(sq, d_model)
        return proj(ctx, wo, bo)

    x = x_ref[0]                                  # (Sq, D) f32
    enc = enc_ref[0]                              # (Sk, D) f32
    tgt_bias = jnp.where(tmask_ref[0] == 0, jnp.float32(-1e9), jnp.float32(0.0))
    src_bias = jnp.where(smask_ref[0] == 0, jnp.float32(-1e9), jnp.float32(0.0))

    # skip 0: self-attention (K/V are the normed x itself; no redundant kv DMA)
    h = layernorm(x, ln0_a, ln0_b)
    x = x + mha(h, h, tgt_bias,
                sa_wq, sa_bq, sa_wk, sa_bk, sa_wv, sa_bv, sa_wo, sa_bo)

    # skip 1: cross-attention (K/V from raw encoder output)
    h = layernorm(x, ln1_a, ln1_b)
    x = x + mha(h, enc, src_bias,
                ca_wq, ca_bq, ca_wk, ca_bk, ca_wv, ca_bv, ca_wo, ca_bo)

    # skip 2: feed-forward
    h = layernorm(x, ln2_a, ln2_b)
    hid = jnp.maximum(proj(h, ff_w1, ff_b1), 0.0)  # relu; dropout(p=0) == identity
    x = x + proj(hid, ff_w2, ff_b2)

    o_ref[0] = x


# ---------------------------------------------------------------------------
# pallas_call wrapper (single fused call for the whole decoder layer)
# ---------------------------------------------------------------------------
def decoder_block(x, encoder_output, src_mask, target_mask, params, *,
                  n_heads, fast=True):
    B, Sq, D = x.shape
    Sk = encoder_output.shape[1]
    cdt = jnp.bfloat16 if fast else jnp.float32
    wc = lambda w: w.astype(cdt)                  # halve weight DMA bytes in fast mode
    p = params

    operands = (
        x, encoder_output, target_mask.astype(jnp.int32), src_mask.astype(jnp.int32),
        p["ln0_a"], p["ln0_b"],
        wc(p["sa_wq"]), p["sa_bq"], wc(p["sa_wk"]), p["sa_bk"],
        wc(p["sa_wv"]), p["sa_bv"], wc(p["sa_wo"]), p["sa_bo"],
        p["ln1_a"], p["ln1_b"],
        wc(p["ca_wq"]), p["ca_bq"], wc(p["ca_wk"]), p["ca_bk"],
        wc(p["ca_wv"]), p["ca_bv"], wc(p["ca_wo"]), p["ca_bo"],
        p["ln2_a"], p["ln2_b"],
        wc(p["ff_w1"]), p["ff_b1"], wc(p["ff_w2"]), p["ff_b2"],
    )

    def batch_spec(s1, s2):
        return pl.BlockSpec((1, s1, s2), lambda b: (b, 0, 0))

    def resident(a):
        shp = a.shape
        return pl.BlockSpec(shp, lambda b, _n=len(shp): (0,) * _n)

    in_specs = [
        batch_spec(Sq, D),    # x
        batch_spec(Sk, D),    # encoder_output
        batch_spec(Sq, Sq),   # target mask
        batch_spec(Sq, Sk),   # src mask
    ] + [resident(a) for a in operands[4:]]

    kernel = functools.partial(_decoder_block_kernel, n_heads, fast)
    return pl.pallas_call(
        kernel,
        out_shape=jax.ShapeDtypeStruct((B, Sq, D), jnp.float32),
        grid=(B,),
        in_specs=in_specs,
        out_specs=pl.BlockSpec((1, Sq, D), lambda b: (b, 0, 0)),
        compiler_params=pltpu.CompilerParams(
            dimension_semantics=("parallel",),
            vmem_limit_bytes=32 * 1024 * 1024,
        ),
    )(*operands)


# ---------------------------------------------------------------------------
# Pure-JAX reference (same math, no Pallas) for a sanity check
# ---------------------------------------------------------------------------
def _ref_attn(x_q, kv, mask, wq, bq, wk, bk, wv, bv, wo, bo, n_heads):
    B, Sq, D = x_q.shape
    Sk = kv.shape[1]
    d_k = D // n_heads
    q = (x_q @ wq + bq[0]).reshape(B, Sq, n_heads, d_k).transpose(0, 2, 1, 3)
    k = (kv @ wk + bk[0]).reshape(B, Sk, n_heads, d_k).transpose(0, 2, 1, 3)
    v = (kv @ wv + bv[0]).reshape(B, Sk, n_heads, d_k).transpose(0, 2, 1, 3)
    scores = jnp.einsum("bhqd,bhkd->bhqk", q, k) / math.sqrt(d_k)
    scores = jnp.where(mask[:, None, :, :] == 0, -1e9, scores)
    probs = jax.nn.softmax(scores, axis=-1)
    out = jnp.einsum("bhqk,bhkd->bhqd", probs, v).transpose(0, 2, 1, 3).reshape(B, Sq, D)
    return out @ wo + bo[0]


def _ref_ln(x, a, b):
    d = x.shape[-1]
    mean = jnp.mean(x, axis=-1, keepdims=True)
    var = jnp.sum((x - mean) ** 2, axis=-1, keepdims=True) / (d - 1)
    return a[0] * ((x - mean) / (jnp.sqrt(var) + EPS)) + b[0]


def decoder_block_ref(x, enc, src_mask, tgt_mask, p, n_heads):
    h = _ref_ln(x, p["ln0_a"], p["ln0_b"])
    x = x + _ref_attn(h, h, tgt_mask, p["sa_wq"], p["sa_bq"], p["sa_wk"], p["sa_bk"],
                      p["sa_wv"], p["sa_bv"], p["sa_wo"], p["sa_bo"], n_heads)
    h = _ref_ln(x, p["ln1_a"], p["ln1_b"])
    x = x + _ref_attn(h, enc, src_mask, p["ca_wq"], p["ca_bq"], p["ca_wk"], p["ca_bk"],
                      p["ca_wv"], p["ca_bv"], p["ca_wo"], p["ca_bo"], n_heads)
    h = _ref_ln(x, p["ln2_a"], p["ln2_b"])
    x = x + (jnp.maximum(h @ p["ff_w1"] + p["ff_b1"][0], 0.0) @ p["ff_w2"] + p["ff_b2"][0])
    return x


# ---------------------------------------------------------------------------
# Main
# ---------------------------------------------------------------------------
if __name__ == "__main__":
    B, S, S_ENC = 2, 8, 8
    D_MODEL, N_HEADS, D_FF = 32, 4, 64

    key = jax.random.PRNGKey(0)
    ks = iter(jax.random.split(key, 32))

    def lin(k, n_in, n_out):
        kw, kb = jax.random.split(k)
        w = jax.random.normal(kw, (n_in, n_out), jnp.float32) * (1.0 / math.sqrt(n_in))
        b = jax.random.normal(kb, (1, n_out), jnp.float32) * 0.01
        return w, b

    params = {}
    for pfx in ("sa", "ca"):
        for name in ("wq", "wk", "wv", "wo"):
            w, b = lin(next(ks), D_MODEL, D_MODEL)
            params[f"{pfx}_{name}"] = w
            params[f"{pfx}_b{name[-1]}"] = b
    params["ff_w1"], params["ff_b1"] = lin(next(ks), D_MODEL, D_FF)
    params["ff_w2"], params["ff_b2"] = lin(next(ks), D_FF, D_MODEL)
    for i in range(3):
        params[f"ln{i}_a"] = jnp.ones((1, D_MODEL), jnp.float32)
        params[f"ln{i}_b"] = jnp.zeros((1, D_MODEL), jnp.float32)

    x = jax.random.normal(next(ks), (B, S, D_MODEL), jnp.float32)
    encoder_output = jax.random.normal(next(ks), (B, S_ENC, D_MODEL), jnp.float32)

    # target mask: causal; src mask: mask out the last encoder position of batch 1
    target_mask = jnp.broadcast_to(
        jnp.tril(jnp.ones((S, S), jnp.int32))[None], (B, S, S))
    src_mask = jnp.ones((B, S, S_ENC), jnp.int32)
    src_mask = src_mask.at[1, :, -1].set(0)

    ref = decoder_block_ref(x, encoder_output, src_mask, target_mask, params, N_HEADS)

    # 1) exact-math path (f32 matmuls, exact divides): tight correctness check.
    out_exact = decoder_block(x, encoder_output, src_mask, target_mask, params,
                              n_heads=N_HEADS, fast=False)
    out_exact = jax.block_until_ready(out_exact)
    assert out_exact.shape == (B, S, D_MODEL)
    err_exact = float(jnp.max(jnp.abs(out_exact - ref)))
    assert jnp.allclose(out_exact, ref, atol=1e-4, rtol=1e-4), err_exact

    # 2) fast path (bf16 MXU operands, f32 accumulation, approx reciprocals):
    #    looser tolerance because of bf16 operand rounding.
    out_fast = decoder_block(x, encoder_output, src_mask, target_mask, params,
                             n_heads=N_HEADS, fast=True)
    out_fast = jax.block_until_ready(out_fast)
    assert out_fast.shape == (B, S, D_MODEL)
    err_fast = float(jnp.max(jnp.abs(out_fast - ref)))
    assert jnp.allclose(out_fast, ref, atol=1.5e-1, rtol=1e-1), err_fast

    print("KERNEL_OK")
</pallas_src>

<mosaic_0001>
module attributes {stable_mosaic.version = 11 : i64} {
  func.func @_decoder_block_kernel(%arg0: i32, %arg1: memref<1x8x32xf32, #tpu.memory_space<vmem>>, %arg2: memref<1x8x32xf32, #tpu.memory_space<vmem>>, %arg3: memref<1x8x8xi32, #tpu.memory_space<vmem>>, %arg4: memref<1x8x8xi32, #tpu.memory_space<vmem>>, %arg5: memref<1x32xf32, #tpu.memory_space<vmem>>, %arg6: memref<1x32xf32, #tpu.memory_space<vmem>>, %arg7: memref<32x32xf32, #tpu.memory_space<vmem>>, %arg8: memref<1x32xf32, #tpu.memory_space<vmem>>, %arg9: memref<32x32xf32, #tpu.memory_space<vmem>>, %arg10: memref<1x32xf32, #tpu.memory_space<vmem>>, %arg11: memref<32x32xf32, #tpu.memory_space<vmem>>, %arg12: memref<1x32xf32, #tpu.memory_space<vmem>>, %arg13: memref<32x32xf32, #tpu.memory_space<vmem>>, %arg14: memref<1x32xf32, #tpu.memory_space<vmem>>, %arg15: memref<1x32xf32, #tpu.memory_space<vmem>>, %arg16: memref<1x32xf32, #tpu.memory_space<vmem>>, %arg17: memref<32x32xf32, #tpu.memory_space<vmem>>, %arg18: memref<1x32xf32, #tpu.memory_space<vmem>>, %arg19: memref<32x32xf32, #tpu.memory_space<vmem>>, %arg20: memref<1x32xf32, #tpu.memory_space<vmem>>, %arg21: memref<32x32xf32, #tpu.memory_space<vmem>>, %arg22: memref<1x32xf32, #tpu.memory_space<vmem>>, %arg23: memref<32x32xf32, #tpu.memory_space<vmem>>, %arg24: memref<1x32xf32, #tpu.memory_space<vmem>>, %arg25: memref<1x32xf32, #tpu.memory_space<vmem>>, %arg26: memref<1x32xf32, #tpu.memory_space<vmem>>, %arg27: memref<32x64xf32, #tpu.memory_space<vmem>>, %arg28: memref<1x64xf32, #tpu.memory_space<vmem>>, %arg29: memref<64x32xf32, #tpu.memory_space<vmem>>, %arg30: memref<1x32xf32, #tpu.memory_space<vmem>>, %arg31: memref<1x8x32xf32, #tpu.memory_space<vmem>>) attributes {dimension_semantics = [#tpu.dimension_semantics<parallel>], iteration_bounds = array<i64: 2>, scalar_prefetch = 0 : i64, scratch_operands = 0 : i64, tpu.core_type = #tpu.core_type<tc>, window_params = [{transform_indices = @transform_0, window_bounds = array<i64: 1, 8, 32>}, {transform_indices = @transform_1, window_bounds = array<i64: 1, 8, 32>}, {transform_indices = @transform_2, window_bounds = array<i64: 1, 8, 8>}, {transform_indices = @transform_3, window_bounds = array<i64: 1, 8, 8>}, {pipeline_mode = #tpu.pipeline_mode<synchronous>, transform_indices = @transform_4, window_bounds = array<i64: 1, 32>}, {pipeline_mode = #tpu.pipeline_mode<synchronous>, transform_indices = @transform_5, window_bounds = array<i64: 1, 32>}, {pipeline_mode = #tpu.pipeline_mode<synchronous>, transform_indices = @transform_6, window_bounds = array<i64: 32, 32>}, {pipeline_mode = #tpu.pipeline_mode<synchronous>, transform_indices = @transform_7, window_bounds = array<i64: 1, 32>}, {pipeline_mode = #tpu.pipeline_mode<synchronous>, transform_indices = @transform_8, window_bounds = array<i64: 32, 32>}, {pipeline_mode = #tpu.pipeline_mode<synchronous>, transform_indices = @transform_9, window_bounds = array<i64: 1, 32>}, {pipeline_mode = #tpu.pipeline_mode<synchronous>, transform_indices = @transform_10, window_bounds = array<i64: 32, 32>}, {pipeline_mode = #tpu.pipeline_mode<synchronous>, transform_indices = @transform_11, window_bounds = array<i64: 1, 32>}, {pipeline_mode = #tpu.pipeline_mode<synchronous>, transform_indices = @transform_12, window_bounds = array<i64: 32, 32>}, {pipeline_mode = #tpu.pipeline_mode<synchronous>, transform_indices = @transform_13, window_bounds = array<i64: 1, 32>}, {pipeline_mode = #tpu.pipeline_mode<synchronous>, transform_indices = @transform_14, window_bounds = array<i64: 1, 32>}, {pipeline_mode = #tpu.pipeline_mode<synchronous>, transform_indices = @transform_15, window_bounds = array<i64: 1, 32>}, {pipeline_mode = #tpu.pipeline_mode<synchronous>, transform_indices = @transform_16, window_bounds = array<i64: 32, 32>}, {pipeline_mode = #tpu.pipeline_mode<synchronous>, transform_indices = @transform_17, window_bounds = array<i64: 1, 32>}, {pipeline_mode = #tpu.pipeline_mode<synchronous>, transform_indices = @transform_18, window_bounds = array<i64: 32, 32>}, {pipeline_mode = #tpu.pipeline_mode<synchronous>, transform_indices = @transform_19, window_bounds = array<i64: 1, 32>}, {pipeline_mode = #tpu.pipeline_mode<synchronous>, transform_indices = @transform_20, window_bounds = array<i64: 32, 32>}, {pipeline_mode = #tpu.pipeline_mode<synchronous>, transform_indices = @transform_21, window_bounds = array<i64: 1, 32>}, {pipeline_mode = #tpu.pipeline_mode<synchronous>, transform_indices = @transform_22, window_bounds = array<i64: 32, 32>}, {pipeline_mode = #tpu.pipeline_mode<synchronous>, transform_indices = @transform_23, window_bounds = array<i64: 1, 32>}, {pipeline_mode = #tpu.pipeline_mode<synchronous>, transform_indices = @transform_24, window_bounds = array<i64: 1, 32>}, {pipeline_mode = #tpu.pipeline_mode<synchronous>, transform_indices = @transform_25, window_bounds = array<i64: 1, 32>}, {pipeline_mode = #tpu.pipeline_mode<synchronous>, transform_indices = @transform_26, window_bounds = array<i64: 32, 64>}, {pipeline_mode = #tpu.pipeline_mode<synchronous>, transform_indices = @transform_27, window_bounds = array<i64: 1, 64>}, {pipeline_mode = #tpu.pipeline_mode<synchronous>, transform_indices = @transform_28, window_bounds = array<i64: 64, 32>}, {pipeline_mode = #tpu.pipeline_mode<synchronous>, transform_indices = @transform_29, window_bounds = array<i64: 1, 32>}, {transform_indices = @transform_30, window_bounds = array<i64: 1, 8, 32>}]} {
    %c0 = arith.constant 0 : index
    %c0_0 = arith.constant 0 : index
    %c0_1 = arith.constant 0 : index
    %0 = vector.load %arg1[%c0, %c0_0, %c0_1] : memref<1x8x32xf32, #tpu.memory_space<vmem>>, vector<1x8x32xf32>
    %1 = vector.shape_cast %0 : vector<1x8x32xf32> to vector<8x32xf32>
    %c0_2 = arith.constant 0 : index
    %c0_3 = arith.constant 0 : index
    %c0_4 = arith.constant 0 : index
    %2 = vector.load %arg2[%c0_2, %c0_3, %c0_4] : memref<1x8x32xf32, #tpu.memory_space<vmem>>, vector<1x8x32xf32>
    %3 = vector.shape_cast %2 : vector<1x8x32xf32> to vector<8x32xf32>
    %c0_5 = arith.constant 0 : index
    %c0_6 = arith.constant 0 : index
    %c0_7 = arith.constant 0 : index
    %4 = vector.load %arg3[%c0_5, %c0_6, %c0_7] : memref<1x8x8xi32, #tpu.memory_space<vmem>>, vector<1x8x8xi32>
    %5 = vector.shape_cast %4 : vector<1x8x8xi32> to vector<8x8xi32>
    %c0_i32 = arith.constant 0 : i32
    %6 = vector.broadcast %c0_i32 : i32 to vector<8x8xi32>
    %7 = arith.cmpi eq, %5, %6 : vector<8x8xi32>
    %cst = arith.constant -1.000000e+09 : f32
    %cst_8 = arith.constant 0.000000e+00 : f32
    %8 = vector.broadcast %cst : f32 to vector<8x8xf32>
    %9 = vector.broadcast %cst_8 : f32 to vector<8x8xf32>
    %10 = arith.select %7, %8, %9 : vector<8x8xi1>, vector<8x8xf32>
    %c0_9 = arith.constant 0 : index
    %c0_10 = arith.constant 0 : index
    %c0_11 = arith.constant 0 : index
    %11 = vector.load %arg4[%c0_9, %c0_10, %c0_11] : memref<1x8x8xi32, #tpu.memory_space<vmem>>, vector<1x8x8xi32>
    %12 = vector.shape_cast %11 : vector<1x8x8xi32> to vector<8x8xi32>
    %c0_i32_12 = arith.constant 0 : i32
    %13 = vector.broadcast %c0_i32_12 : i32 to vector<8x8xi32>
    %14 = arith.cmpi eq, %12, %13 : vector<8x8xi32>
    %cst_13 = arith.constant -1.000000e+09 : f32
    %cst_14 = arith.constant 0.000000e+00 : f32
    %15 = vector.broadcast %cst_13 : f32 to vector<8x8xf32>
    %16 = vector.broadcast %cst_14 : f32 to vector<8x8xf32>
    %17 = arith.select %14, %15, %16 : vector<8x8xi1>, vector<8x8xf32>
    %cst_15 = arith.constant dense<0.000000e+00> : vector<8xf32>
    %18 = vector.multi_reduction <add>, %1, %cst_15 [1] : vector<8x32xf32> to vector<8xf32>
    %19 = vector.shape_cast %18 : vector<8xf32> to vector<8x1xf32>
    %cst_16 = arith.constant 3.200000e+01 : f32
    %20 = vector.broadcast %cst_16 : f32 to vector<8x1xf32>
    %21 = arith.divf %19, %20 : vector<8x1xf32>
    %22 = vector.broadcast %21 : vector<8x1xf32> to vector<8x32xf32>
    %23 = arith.subf %1, %22 : vector<8x32xf32>
    %24 = arith.mulf %23, %23 : vector<8x32xf32>
    %cst_17 = arith.constant dense<0.000000e+00> : vector<8xf32>
    %25 = vector.multi_reduction <add>, %24, %cst_17 [1] : vector<8x32xf32> to vector<8xf32>
    %26 = vector.shape_cast %25 : vector<8xf32> to vector<8x1xf32>
    %cst_18 = arith.constant 0.0322580636 : f32
    %27 = vector.broadcast %cst_18 : f32 to vector<8x1xf32>
    %28 = arith.mulf %26, %27 : vector<8x1xf32>
    %29 = math.sqrt %28 : vector<8x1xf32>
    %cst_19 = arith.constant 9.99999997E-7 : f32
    %30 = vector.broadcast %cst_19 : f32 to vector<8x1xf32>
    %31 = arith.addf %29, %30 : vector<8x1xf32>
    %cst_20 = arith.constant 1.000000e+00 : f32
    %32 = vector.broadcast %cst_20 : f32 to vector<8x1xf32>
    %33 = arith.divf %32, %31 : vector<8x1xf32>
    %c0_21 = arith.constant 0 : index
    %c0_22 = arith.constant 0 : index
    %34 = vector.load %arg5[%c0_21, %c0_22] : memref<1x32xf32, #tpu.memory_space<vmem>>, vector<1x32xf32>
    %35 = vector.shape_cast %34 : vector<1x32xf32> to vector<32xf32>
    %36 = vector.broadcast %33 : vector<8x1xf32> to vector<8x32xf32>
    %37 = arith.mulf %23, %36 : vector<8x32xf32>
    %38 = vector.shape_cast %35 : vector<32xf32> to vector<1x32xf32>
    %39 = vector.broadcast %38 : vector<1x32xf32> to vector<8x32xf32>
    %40 = arith.mulf %39, %37 : vector<8x32xf32>
    %c0_23 = arith.constant 0 : index
    %c0_24 = arith.constant 0 : index
    %41 = vector.load %arg6[%c0_23, %c0_24] : memref<1x32xf32, #tpu.memory_space<vmem>>, vector<1x32xf32>
    %42 = vector.shape_cast %41 : vector<1x32xf32> to vector<32xf32>
    %43 = vector.shape_cast %42 : vector<32xf32> to vector<1x32xf32>
    %44 = vector.broadcast %43 : vector<1x32xf32> to vector<8x32xf32>
    %45 = arith.addf %40, %44 : vector<8x32xf32>
    %c0_25 = arith.constant 0 : index
    %c0_26 = arith.constant 0 : index
    %46 = vector.load %arg7[%c0_25, %c0_26] : memref<32x32xf32, #tpu.memory_space<vmem>>, vector<32x32xf32>
    %cst_27 = arith.constant dense<0.000000e+00> : vector<8x32xf32>
    %47 = tpu.matmul %45, %46, %cst_27 {dimension_numbers = #tpu.dot_dimension_numbers<[1], [0], [0], [1], [0, 0, 1, 1], [], []>} : vector<8x32xf32>, vector<32x32xf32>, vector<8x32xf32> -> vector<8x32xf32>
    %c0_28 = arith.constant 0 : index
    %c0_29 = arith.constant 0 : index
    %48 = vector.load %arg8[%c0_28, %c0_29] : memref<1x32xf32, #tpu.memory_space<vmem>>, vector<1x32xf32>
    %49 = vector.shape_cast %48 : vector<1x32xf32> to vector<32xf32>
    %50 = vector.shape_cast %49 : vector<32xf32> to vector<1x32xf32>
    %51 = vector.broadcast %50 : vector<1x32xf32> to vector<8x32xf32>
    %52 = arith.addf %47, %51 : vector<8x32xf32>
    %cst_30 = arith.constant 0.353553385 : f32
    %53 = vector.broadcast %cst_30 : f32 to vector<8x32xf32>
    %54 = arith.mulf %52, %53 : vector<8x32xf32>
    %c0_31 = arith.constant 0 : index
    %c0_32 = arith.constant 0 : index
    %55 = vector.load %arg9[%c0_31, %c0_32] : memref<32x32xf32, #tpu.memory_space<vmem>>, vector<32x32xf32>
    %cst_33 = arith.constant dense<0.000000e+00> : vector<8x32xf32>
    %56 = tpu.matmul %45, %55, %cst_33 {dimension_numbers = #tpu.dot_dimension_numbers<[1], [0], [0], [1], [0, 0, 1, 1], [], []>} : vector<8x32xf32>, vector<32x32xf32>, vector<8x32xf32> -> vector<8x32xf32>
    %c0_34 = arith.constant 0 : index
    %c0_35 = arith.constant 0 : index
    %57 = vector.load %arg10[%c0_34, %c0_35] : memref<1x32xf32, #tpu.memory_space<vmem>>, vector<1x32xf32>
    %58 = vector.shape_cast %57 : vector<1x32xf32> to vector<32xf32>
    %59 = vector.shape_cast %58 : vector<32xf32> to vector<1x32xf32>
    %60 = vector.broadcast %59 : vector<1x32xf32> to vector<8x32xf32>
    %61 = arith.addf %56, %60 : vector<8x32xf32>
    %c0_36 = arith.constant 0 : index
    %c0_37 = arith.constant 0 : index
    %62 = vector.load %arg11[%c0_36, %c0_37] : memref<32x32xf32, #tpu.memory_space<vmem>>, vector<32x32xf32>
    %cst_38 = arith.constant dense<0.000000e+00> : vector<8x32xf32>
    %63 = tpu.matmul %45, %62, %cst_38 {dimension_numbers = #tpu.dot_dimension_numbers<[1], [0], [0], [1], [0, 0, 1, 1], [], []>} : vector<8x32xf32>, vector<32x32xf32>, vector<8x32xf32> -> vector<8x32xf32>
    %c0_39 = arith.constant 0 : index
    %c0_40 = arith.constant 0 : index
    %64 = vector.load %arg12[%c0_39, %c0_40] : memref<1x32xf32, #tpu.memory_space<vmem>>, vector<1x32xf32>
    %65 = vector.shape_cast %64 : vector<1x32xf32> to vector<32xf32>
    %66 = vector.shape_cast %65 : vector<32xf32> to vector<1x32xf32>
    %67 = vector.broadcast %66 : vector<1x32xf32> to vector<8x32xf32>
    %68 = arith.addf %63, %67 : vector<8x32xf32>
    %69 = vector.shape_cast %54 : vector<8x32xf32> to vector<8x4x8xf32>
    %70 = tpu.transpose %69, [1, 0, 2] : vector<8x4x8xf32> -> vector<4x8x8xf32>
    %71 = vector.shape_cast %61 : vector<8x32xf32> to vector<8x4x8xf32>
    %72 = tpu.transpose %71, [1, 0, 2] : vector<8x4x8xf32> -> vector<4x8x8xf32>
    %73 = vector.shape_cast %68 : vector<8x32xf32> to vector<8x4x8xf32>
    %74 = tpu.transpose %73, [1, 0, 2] : vector<8x4x8xf32> -> vector<4x8x8xf32>
    "tpu.trace_start"() <{level = 10 : i32, message = "hqd,hkd->hqk"}> : () -> ()
    %cst_41 = arith.constant dense<0.000000e+00> : vector<4x8x8xf32>
    %75 = tpu.matmul %70, %72, %cst_41 {dimension_numbers = #tpu.dot_dimension_numbers<[2], [2], [1], [1], [0, 0, 0, 1, 1, 1], [0], [0]>} : vector<4x8x8xf32>, vector<4x8x8xf32>, vector<4x8x8xf32> -> vector<4x8x8xf32>
    "tpu.trace_stop"() : () -> ()
    %76 = vector.shape_cast %10 : vector<8x8xf32> to vector<1x8x8xf32>
    %77 = vector.broadcast %76 : vector<1x8x8xf32> to vector<4x8x8xf32>
    %78 = arith.addf %75, %77 : vector<4x8x8xf32>
    %cst_42 = arith.constant dense<0xFF800000> : vector<4x8xf32>
    %79 = vector.multi_reduction <maximumf>, %78, %cst_42 [2] : vector<4x8x8xf32> to vector<4x8xf32>
    %80 = vector.shape_cast %79 : vector<4x8xf32> to vector<4x8x1xf32>
    %81 = vector.broadcast %80 : vector<4x8x1xf32> to vector<4x8x8xf32>
    %82 = arith.subf %78, %81 : vector<4x8x8xf32>
    %83 = math.exp %82 : vector<4x8x8xf32>
    %cst_43 = arith.constant dense<0.000000e+00> : vector<4x8xf32>
    %84 = vector.multi_reduction <add>, %83, %cst_43 [2] : vector<4x8x8xf32> to vector<4x8xf32>
    %85 = vector.shape_cast %84 : vector<4x8xf32> to vector<4x8x1xf32>
    %cst_44 = arith.constant 1.000000e+00 : f32
    %86 = vector.broadcast %cst_44 : f32 to vector<4x8x1xf32>
    %87 = arith.divf %86, %85 : vector<4x8x1xf32>
    %88 = vector.broadcast %87 : vector<4x8x1xf32> to vector<4x8x8xf32>
    %89 = arith.mulf %83, %88 : vector<4x8x8xf32>
    "tpu.trace_start"() <{level = 10 : i32, message = "hqk,hkd->hqd"}> : () -> ()
    %cst_45 = arith.constant dense<0.000000e+00> : vector<4x8x8xf32>
    %90 = tpu.matmul %89, %74, %cst_45 {dimension_numbers = #tpu.dot_dimension_numbers<[2], [1], [1], [2], [0, 0, 0, 1, 1, 2], [0], [0]>} : vector<4x8x8xf32>, vector<4x8x8xf32>, vector<4x8x8xf32> -> vector<4x8x8xf32>
    "tpu.trace_stop"() : () -> ()
    %91 = tpu.transpose %90, [1, 0, 2] : vector<4x8x8xf32> -> vector<8x4x8xf32>
    %92 = vector.shape_cast %91 : vector<8x4x8xf32> to vector<8x32xf32>
    %c0_46 = arith.constant 0 : index
    %c0_47 = arith.constant 0 : index
    %93 = vector.load %arg13[%c0_46, %c0_47] : memref<32x32xf32, #tpu.memory_space<vmem>>, vector<32x32xf32>
    %cst_48 = arith.constant dense<0.000000e+00> : vector<8x32xf32>
    %94 = tpu.matmul %92, %93, %cst_48 {dimension_numbers = #tpu.dot_dimension_numbers<[1], [0], [0], [1], [0, 0, 1, 1], [], []>} : vector<8x32xf32>, vector<32x32xf32>, vector<8x32xf32> -> vector<8x32xf32>
    %c0_49 = arith.constant 0 : index
    %c0_50 = arith.constant 0 : index
    %95 = vector.load %arg14[%c0_49, %c0_50] : memref<1x32xf32, #tpu.memory_space<vmem>>, vector<1x32xf32>
    %96 = vector.shape_cast %95 : vector<1x32xf32> to vector<32xf32>
    %97 = vector.shape_cast %96 : vector<32xf32> to vector<1x32xf32>
    %98 = vector.broadcast %97 : vector<1x32xf32> to vector<8x32xf32>
    %99 = arith.addf %94, %98 : vector<8x32xf32>
    %100 = arith.addf %1, %99 : vector<8x32xf32>
    %cst_51 = arith.constant dense<0.000000e+00> : vector<8xf32>
    %101 = vector.multi_reduction <add>, %100, %cst_51 [1] : vector<8x32xf32> to vector<8xf32>
    %102 = vector.shape_cast %101 : vector<8xf32> to vector<8x1xf32>
    %cst_52 = arith.constant 3.200000e+01 : f32
    %103 = vector.broadcast %cst_52 : f32 to vector<8x1xf32>
    %104 = arith.divf %102, %103 : vector<8x1xf32>
    %105 = vector.broadcast %104 : vector<8x1xf32> to vector<8x32xf32>
    %106 = arith.subf %100, %105 : vector<8x32xf32>
    %107 = arith.mulf %106, %106 : vector<8x32xf32>
    %cst_53 = arith.constant dense<0.000000e+00> : vector<8xf32>
    %108 = vector.multi_reduction <add>, %107, %cst_53 [1] : vector<8x32xf32> to vector<8xf32>
    %109 = vector.shape_cast %108 : vector<8xf32> to vector<8x1xf32>
    %cst_54 = arith.constant 0.0322580636 : f32
    %110 = vector.broadcast %cst_54 : f32 to vector<8x1xf32>
    %111 = arith.mulf %109, %110 : vector<8x1xf32>
    %112 = math.sqrt %111 : vector<8x1xf32>
    %cst_55 = arith.constant 9.99999997E-7 : f32
    %113 = vector.broadcast %cst_55 : f32 to vector<8x1xf32>
    %114 = arith.addf %112, %113 : vector<8x1xf32>
    %cst_56 = arith.constant 1.000000e+00 : f32
    %115 = vector.broadcast %cst_56 : f32 to vector<8x1xf32>
    %116 = arith.divf %115, %114 : vector<8x1xf32>
    %c0_57 = arith.constant 0 : index
    %c0_58 = arith.constant 0 : index
    %117 = vector.load %arg15[%c0_57, %c0_58] : memref<1x32xf32, #tpu.memory_space<vmem>>, vector<1x32xf32>
    %118 = vector.shape_cast %117 : vector<1x32xf32> to vector<32xf32>
    %119 = vector.broadcast %116 : vector<8x1xf32> to vector<8x32xf32>
    %120 = arith.mulf %106, %119 : vector<8x32xf32>
    %121 = vector.shape_cast %118 : vector<32xf32> to vector<1x32xf32>
    %122 = vector.broadcast %121 : vector<1x32xf32> to vector<8x32xf32>
    %123 = arith.mulf %122, %120 : vector<8x32xf32>
    %c0_59 = arith.constant 0 : index
    %c0_60 = arith.constant 0 : index
    %124 = vector.load %arg16[%c0_59, %c0_60] : memref<1x32xf32, #tpu.memory_space<vmem>>, vector<1x32xf32>
    %125 = vector.shape_cast %124 : vector<1x32xf32> to vector<32xf32>
    %126 = vector.shape_cast %125 : vector<32xf32> to vector<1x32xf32>
    %127 = vector.broadcast %126 : vector<1x32xf32> to vector<8x32xf32>
    %128 = arith.addf %123, %127 : vector<8x32xf32>
    %c0_61 = arith.constant 0 : index
    %c0_62 = arith.constant 0 : index
    %129 = vector.load %arg17[%c0_61, %c0_62] : memref<32x32xf32, #tpu.memory_space<vmem>>, vector<32x32xf32>
    %cst_63 = arith.constant dense<0.000000e+00> : vector<8x32xf32>
    %130 = tpu.matmul %128, %129, %cst_63 {dimension_numbers = #tpu.dot_dimension_numbers<[1], [0], [0], [1], [0, 0, 1, 1], [], []>} : vector<8x32xf32>, vector<32x32xf32>, vector<8x32xf32> -> vector<8x32xf32>
    %c0_64 = arith.constant 0 : index
    %c0_65 = arith.constant 0 : index
    %131 = vector.load %arg18[%c0_64, %c0_65] : memref<1x32xf32, #tpu.memory_space<vmem>>, vector<1x32xf32>
    %132 = vector.shape_cast %131 : vector<1x32xf32> to vector<32xf32>
    %133 = vector.shape_cast %132 : vector<32xf32> to vector<1x32xf32>
    %134 = vector.broadcast %133 : vector<1x32xf32> to vector<8x32xf32>
    %135 = arith.addf %130, %134 : vector<8x32xf32>
    %cst_66 = arith.constant 0.353553385 : f32
    %136 = vector.broadcast %cst_66 : f32 to vector<8x32xf32>
    %137 = arith.mulf %135, %136 : vector<8x32xf32>
    %c0_67 = arith.constant 0 : index
    %c0_68 = arith.constant 0 : index
    %138 = vector.load %arg19[%c0_67, %c0_68] : memref<32x32xf32, #tpu.memory_space<vmem>>, vector<32x32xf32>
    %cst_69 = arith.constant dense<0.000000e+00> : vector<8x32xf32>
    %139 = tpu.matmul %3, %138, %cst_69 {dimension_numbers = #tpu.dot_dimension_numbers<[1], [0], [0], [1], [0, 0, 1, 1], [], []>} : vector<8x32xf32>, vector<32x32xf32>, vector<8x32xf32> -> vector<8x32xf32>
    %c0_70 = arith.constant 0 : index
    %c0_71 = arith.constant 0 : index
    %140 = vector.load %arg20[%c0_70, %c0_71] : memref<1x32xf32, #tpu.memory_space<vmem>>, vector<1x32xf32>
    %141 = vector.shape_cast %140 : vector<1x32xf32> to vector<32xf32>
    %142 = vector.shape_cast %141 : vector<32xf32> to vector<1x32xf32>
    %143 = vector.broadcast %142 : vector<1x32xf32> to vector<8x32xf32>
    %144 = arith.addf %139, %143 : vector<8x32xf32>
    %c0_72 = arith.constant 0 : index
    %c0_73 = arith.constant 0 : index
    %145 = vector.load %arg21[%c0_72, %c0_73] : memref<32x32xf32, #tpu.memory_space<vmem>>, vector<32x32xf32>
    %cst_74 = arith.constant dense<0.000000e+00> : vector<8x32xf32>
    %146 = tpu.matmul %3, %145, %cst_74 {dimension_numbers = #tpu.dot_dimension_numbers<[1], [0], [0], [1], [0, 0, 1, 1], [], []>} : vector<8x32xf32>, vector<32x32xf32>, vector<8x32xf32> -> vector<8x32xf32>
    %c0_75 = arith.constant 0 : index
    %c0_76 = arith.constant 0 : index
    %147 = vector.load %arg22[%c0_75, %c0_76] : memref<1x32xf32, #tpu.memory_space<vmem>>, vector<1x32xf32>
    %148 = vector.shape_cast %147 : vector<1x32xf32> to vector<32xf32>
    %149 = vector.shape_cast %148 : vector<32xf32> to vector<1x32xf32>
    %150 = vector.broadcast %149 : vector<1x32xf32> to vector<8x32xf32>
    %151 = arith.addf %146, %150 : vector<8x32xf32>
    %152 = vector.shape_cast %137 : vector<8x32xf32> to vector<8x4x8xf32>
    %153 = tpu.transpose %152, [1, 0, 2] : vector<8x4x8xf32> -> vector<4x8x8xf32>
    %154 = vector.shape_cast %144 : vector<8x32xf32> to vector<8x4x8xf32>
    %155 = tpu.transpose %154, [1, 0, 2] : vector<8x4x8xf32> -> vector<4x8x8xf32>
    %156 = vector.shape_cast %151 : vector<8x32xf32> to vector<8x4x8xf32>
    %157 = tpu.transpose %156, [1, 0, 2] : vector<8x4x8xf32> -> vector<4x8x8xf32>
    "tpu.trace_start"() <{level = 10 : i32, message = "hqd,hkd->hqk"}> : () -> ()
    %cst_77 = arith.constant dense<0.000000e+00> : vector<4x8x8xf32>
    %158 = tpu.matmul %153, %155, %cst_77 {dimension_numbers = #tpu.dot_dimension_numbers<[2], [2], [1], [1], [0, 0, 0, 1, 1, 1], [0], [0]>} : vector<4x8x8xf32>, vector<4x8x8xf32>, vector<4x8x8xf32> -> vector<4x8x8xf32>
    "tpu.trace_stop"() : () -> ()
    %159 = vector.shape_cast %17 : vector<8x8xf32> to vector<1x8x8xf32>
    %160 = vector.broadcast %159 : vector<1x8x8xf32> to vector<4x8x8xf32>
    %161 = arith.addf %158, %160 : vector<4x8x8xf32>
    %cst_78 = arith.constant dense<0xFF800000> : vector<4x8xf32>
    %162 = vector.multi_reduction <maximumf>, %161, %cst_78 [2] : vector<4x8x8xf32> to vector<4x8xf32>
    %163 = vector.shape_cast %162 : vector<4x8xf32> to vector<4x8x1xf32>
    %164 = vector.broadcast %163 : vector<4x8x1xf32> to vector<4x8x8xf32>
    %165 = arith.subf %161, %164 : vector<4x8x8xf32>
    %166 = math.exp %165 : vector<4x8x8xf32>
    %cst_79 = arith.constant dense<0.000000e+00> : vector<4x8xf32>
    %167 = vector.multi_reduction <add>, %166, %cst_79 [2] : vector<4x8x8xf32> to vector<4x8xf32>
    %168 = vector.shape_cast %167 : vector<4x8xf32> to vector<4x8x1xf32>
    %cst_80 = arith.constant 1.000000e+00 : f32
    %169 = vector.broadcast %cst_80 : f32 to vector<4x8x1xf32>
    %170 = arith.divf %169, %168 : vector<4x8x1xf32>
    %171 = vector.broadcast %170 : vector<4x8x1xf32> to vector<4x8x8xf32>
    %172 = arith.mulf %166, %171 : vector<4x8x8xf32>
    "tpu.trace_start"() <{level = 10 : i32, message = "hqk,hkd->hqd"}> : () -> ()
    %cst_81 = arith.constant dense<0.000000e+00> : vector<4x8x8xf32>
    %173 = tpu.matmul %172, %157, %cst_81 {dimension_numbers = #tpu.dot_dimension_numbers<[2], [1], [1], [2], [0, 0, 0, 1, 1, 2], [0], [0]>} : vector<4x8x8xf32>, vector<4x8x8xf32>, vector<4x8x8xf32> -> vector<4x8x8xf32>
    "tpu.trace_stop"() : () -> ()
    %174 = tpu.transpose %173, [1, 0, 2] : vector<4x8x8xf32> -> vector<8x4x8xf32>
    %175 = vector.shape_cast %174 : vector<8x4x8xf32> to vector<8x32xf32>
    %c0_82 = arith.constant 0 : index
    %c0_83 = arith.constant 0 : index
    %176 = vector.load %arg23[%c0_82, %c0_83] : memref<32x32xf32, #tpu.memory_space<vmem>>, vector<32x32xf32>
    %cst_84 = arith.constant dense<0.000000e+00> : vector<8x32xf32>
    %177 = tpu.matmul %175, %176, %cst_84 {dimension_numbers = #tpu.dot_dimension_numbers<[1], [0], [0], [1], [0, 0, 1, 1], [], []>} : vector<8x32xf32>, vector<32x32xf32>, vector<8x32xf32> -> vector<8x32xf32>
    %c0_85 = arith.constant 0 : index
    %c0_86 = arith.constant 0 : index
    %178 = vector.load %arg24[%c0_85, %c0_86] : memref<1x32xf32, #tpu.memory_space<vmem>>, vector<1x32xf32>
    %179 = vector.shape_cast %178 : vector<1x32xf32> to vector<32xf32>
    %180 = vector.shape_cast %179 : vector<32xf32> to vector<1x32xf32>
    %181 = vector.broadcast %180 : vector<1x32xf32> to vector<8x32xf32>
    %182 = arith.addf %177, %181 : vector<8x32xf32>
    %183 = arith.addf %100, %182 : vector<8x32xf32>
    %cst_87 = arith.constant dense<0.000000e+00> : vector<8xf32>
    %184 = vector.multi_reduction <add>, %183, %cst_87 [1] : vector<8x32xf32> to vector<8xf32>
    %185 = vector.shape_cast %184 : vector<8xf32> to vector<8x1xf32>
    %cst_88 = arith.constant 3.200000e+01 : f32
    %186 = vector.broadcast %cst_88 : f32 to vector<8x1xf32>
    %187 = arith.divf %185, %186 : vector<8x1xf32>
    %188 = vector.broadcast %187 : vector<8x1xf32> to vector<8x32xf32>
    %189 = arith.subf %183, %188 : vector<8x32xf32>
    %190 = arith.mulf %189, %189 : vector<8x32xf32>
    %cst_89 = arith.constant dense<0.000000e+00> : vector<8xf32>
    %191 = vector.multi_reduction <add>, %190, %cst_89 [1] : vector<8x32xf32> to vector<8xf32>
    %192 = vector.shape_cast %191 : vector<8xf32> to vector<8x1xf32>
    %cst_90 = arith.constant 0.0322580636 : f32
    %193 = vector.broadcast %cst_90 : f32 to vector<8x1xf32>
    %194 = arith.mulf %192, %193 : vector<8x1xf32>
    %195 = math.sqrt %194 : vector<8x1xf32>
    %cst_91 = arith.constant 9.99999997E-7 : f32
    %196 = vector.broadcast %cst_91 : f32 to vector<8x1xf32>
    %197 = arith.addf %195, %196 : vector<8x1xf32>
    %cst_92 = arith.constant 1.000000e+00 : f32
    %198 = vector.broadcast %cst_92 : f32 to vector<8x1xf32>
    %199 = arith.divf %198, %197 : vector<8x1xf32>
    %c0_93 = arith.constant 0 : index
    %c0_94 = arith.constant 0 : index
    %200 = vector.load %arg25[%c0_93, %c0_94] : memref<1x32xf32, #tpu.memory_space<vmem>>, vector<1x32xf32>
    %201 = vector.shape_cast %200 : vector<1x32xf32> to vector<32xf32>
    %202 = vector.broadcast %199 : vector<8x1xf32> to vector<8x32xf32>
    %203 = arith.mulf %189, %202 : vector<8x32xf32>
    %204 = vector.shape_cast %201 : vector<32xf32> to vector<1x32xf32>
    %205 = vector.broadcast %204 : vector<1x32xf32> to vector<8x32xf32>
    %206 = arith.mulf %205, %203 : vector<8x32xf32>
    %c0_95 = arith.constant 0 : index
    %c0_96 = arith.constant 0 : index
    %207 = vector.load %arg26[%c0_95, %c0_96] : memref<1x32xf32, #tpu.memory_space<vmem>>, vector<1x32xf32>
    %208 = vector.shape_cast %207 : vector<1x32xf32> to vector<32xf32>
    %209 = vector.shape_cast %208 : vector<32xf32> to vector<1x32xf32>
    %210 = vector.broadcast %209 : vector<1x32xf32> to vector<8x32xf32>
    %211 = arith.addf %206, %210 : vector<8x32xf32>
    %c0_97 = arith.constant 0 : index
    %c0_98 = arith.constant 0 : index
    %212 = vector.load %arg27[%c0_97, %c0_98] : memref<32x64xf32, #tpu.memory_space<vmem>>, vector<32x64xf32>
    %cst_99 = arith.constant dense<0.000000e+00> : vector<8x64xf32>
    %213 = tpu.matmul %211, %212, %cst_99 {dimension_numbers = #tpu.dot_dimension_numbers<[1], [0], [0], [1], [0, 0, 1, 1], [], []>} : vector<8x32xf32>, vector<32x64xf32>, vector<8x64xf32> -> vector<8x64xf32>
    %c0_100 = arith.constant 0 : index
    %c0_101 = arith.constant 0 : index
    %214 = vector.load %arg28[%c0_100, %c0_101] : memref<1x64xf32, #tpu.memory_space<vmem>>, vector<1x64xf32>
    %215 = vector.shape_cast %214 : vector<1x64xf32> to vector<64xf32>
    %216 = vector.shape_cast %215 : vector<64xf32> to vector<1x64xf32>
    %217 = vector.broadcast %216 : vector<1x64xf32> to vector<8x64xf32>
    %218 = arith.addf %213, %217 : vector<8x64xf32>
    %cst_102 = arith.constant 0.000000e+00 : f32
    %219 = vector.broadcast %cst_102 : f32 to vector<8x64xf32>
    %220 = arith.maximumf %218, %219 : vector<8x64xf32>
    %c0_103 = arith.constant 0 : index
    %c0_104 = arith.constant 0 : index
    %221 = vector.load %arg29[%c0_103, %c0_104] : memref<64x32xf32, #tpu.memory_space<vmem>>, vector<64x32xf32>
    %cst_105 = arith.constant dense<0.000000e+00> : vector<8x32xf32>
    %222 = tpu.matmul %220, %221, %cst_105 {dimension_numbers = #tpu.dot_dimension_numbers<[1], [0], [0], [1], [0, 0, 1, 1], [], []>} : vector<8x64xf32>, vector<64x32xf32>, vector<8x32xf32> -> vector<8x32xf32>
    %c0_106 = arith.constant 0 : index
    %c0_107 = arith.constant 0 : index
    %223 = vector.load %arg30[%c0_106, %c0_107] : memref<1x32xf32, #tpu.memory_space<vmem>>, vector<1x32xf32>
    %224 = vector.shape_cast %223 : vector<1x32xf32> to vector<32xf32>
    %225 = vector.shape_cast %224 : vector<32xf32> to vector<1x32xf32>
    %226 = vector.broadcast %225 : vector<1x32xf32> to vector<8x32xf32>
    %227 = arith.addf %222, %226 : vector<8x32xf32>
    %228 = arith.addf %183, %227 : vector<8x32xf32>
    %c0_108 = arith.constant 0 : index
    %c0_109 = arith.constant 0 : index
    %c0_110 = arith.constant 0 : index
    %229 = vector.load %arg31[%c0_108, %c0_109, %c0_110] : memref<1x8x32xf32, #tpu.memory_space<vmem>>, vector<1x8x32xf32>
    %230 = vector.shape_cast %229 : vector<1x8x32xf32> to vector<8x32xf32>
    %231 = vector.shape_cast %228 : vector<8x32xf32> to vector<1x8x32xf32>
    tpu.vector_store %arg31[%c0_108, %c0_109, %c0_110], %231 {strides = array<i32>} : memref<1x8x32xf32, #tpu.memory_space<vmem>>, vector<1x8x32xf32>,
    return
  }
  func.func @transform_0(%arg0: i32) -> (i32, i32, i32) {
    %c0_i32 = arith.constant 0 : i32
    %c0_i32_0 = arith.constant 0 : i32
    %c0_i32_1 = arith.constant 0 : i32
    return %arg0, %c0_i32, %c0_i32_0 : i32, i32, i32
  }
  func.func @transform_1(%arg0: i32) -> (i32, i32, i32) {
    %c0_i32 = arith.constant 0 : i32
    %c0_i32_0 = arith.constant 0 : i32
    %c0_i32_1 = arith.constant 0 : i32
    return %arg0, %c0_i32, %c0_i32_0 : i32, i32, i32
  }
  func.func @transform_2(%arg0: i32) -> (i32, i32, i32) {
    %c0_i32 = arith.constant 0 : i32
    %c0_i32_0 = arith.constant 0 : i32
    %c0_i32_1 = arith.constant 0 : i32
    return %arg0, %c0_i32, %c0_i32_0 : i32, i32, i32
  }
  func.func @transform_3(%arg0: i32) -> (i32, i32, i32) {
    %c0_i32 = arith.constant 0 : i32
    %c0_i32_0 = arith.constant 0 : i32
    %c0_i32_1 = arith.constant 0 : i32
    return %arg0, %c0_i32, %c0_i32_0 : i32, i32, i32
  }
  func.func @transform_4(%arg0: i32) -> (i32, i32) {
    %c0_i32 = arith.constant 0 : i32
    %c0_i32_0 = arith.constant 0 : i32
    %c0_i32_1 = arith.constant 0 : i32
    return %c0_i32, %c0_i32_0 : i32, i32
  }
  func.func @transform_5(%arg0: i32) -> (i32, i32) {
    %c0_i32 = arith.constant 0 : i32
    %c0_i32_0 = arith.constant 0 : i32
    %c0_i32_1 = arith.constant 0 : i32
    return %c0_i32, %c0_i32_0 : i32, i32
  }
  func.func @transform_6(%arg0: i32) -> (i32, i32) {
    %c0_i32 = arith.constant 0 : i32
    %c0_i32_0 = arith.constant 0 : i32
    %c0_i32_1 = arith.constant 0 : i32
    return %c0_i32, %c0_i32_0 : i32, i32
  }
  func.func @transform_7(%arg0: i32) -> (i32, i32) {
    %c0_i32 = arith.constant 0 : i32
    %c0_i32_0 = arith.constant 0 : i32
    %c0_i32_1 = arith.constant 0 : i32
    return %c0_i32, %c0_i32_0 : i32, i32
  }
  func.func @transform_8(%arg0: i32) -> (i32, i32) {
    %c0_i32 = arith.constant 0 : i32
    %c0_i32_0 = arith.constant 0 : i32
    %c0_i32_1 = arith.constant 0 : i32
    return %c0_i32, %c0_i32_0 : i32, i32
  }
  func.func @transform_9(%arg0: i32) -> (i32, i32) {
    %c0_i32 = arith.constant 0 : i32
    %c0_i32_0 = arith.constant 0 : i32
    %c0_i32_1 = arith.constant 0 : i32
    return %c0_i32, %c0_i32_0 : i32, i32
  }
  func.func @transform_10(%arg0: i32) -> (i32, i32) {
    %c0_i32 = arith.constant 0 : i32
    %c0_i32_0 = arith.constant 0 : i32
    %c0_i32_1 = arith.constant 0 : i32
    return %c0_i32, %c0_i32_0 : i32, i32
  }
  func.func @transform_11(%arg0: i32) -> (i32, i32) {
    %c0_i32 = arith.constant 0 : i32
    %c0_i32_0 = arith.constant 0 : i32
    %c0_i32_1 = arith.constant 0 : i32
    return %c0_i32, %c0_i32_0 : i32, i32
  }
  func.func @transform_12(%arg0: i32) -> (i32, i32) {
    %c0_i32 = arith.constant 0 : i32
    %c0_i32_0 = arith.constant 0 : i32
    %c0_i32_1 = arith.constant 0 : i32
    return %c0_i32, %c0_i32_0 : i32, i32
  }
  func.func @transform_13(%arg0: i32) -> (i32, i32) {
    %c0_i32 = arith.constant 0 : i32
    %c0_i32_0 = arith.constant 0 : i32
    %c0_i32_1 = arith.constant 0 : i32
    return %c0_i32, %c0_i32_0 : i32, i32
  }
  func.func @transform_14(%arg0: i32) -> (i32, i32) {
    %c0_i32 = arith.constant 0 : i32
    %c0_i32_0 = arith.constant 0 : i32
    %c0_i32_1 = arith.constant 0 : i32
    return %c0_i32, %c0_i32_0 : i32, i32
  }
  func.func @transform_15(%arg0: i32) -> (i32, i32) {
    %c0_i32 = arith.constant 0 : i32
    %c0_i32_0 = arith.constant 0 : i32
    %c0_i32_1 = arith.constant 0 : i32
    return %c0_i32, %c0_i32_0 : i32, i32
  }
  func.func @transform_16(%arg0: i32) -> (i32, i32) {
    %c0_i32 = arith.constant 0 : i32
    %c0_i32_0 = arith.constant 0 : i32
    %c0_i32_1 = arith.constant 0 : i32
    return %c0_i32, %c0_i32_0 : i32, i32
  }
  func.func @transform_17(%arg0: i32) -> (i32, i32) {
    %c0_i32 = arith.constant 0 : i32
    %c0_i32_0 = arith.constant 0 : i32
    %c0_i32_1 = arith.constant 0 : i32
    return %c0_i32, %c0_i32_0 : i32, i32
  }
  func.func @transform_18(%arg0: i32) -> (i32, i32) {
    %c0_i32 = arith.constant 0 : i32
    %c0_i32_0 = arith.constant 0 : i32
    %c0_i32_1 = arith.constant 0 : i32
    return %c0_i32, %c0_i32_0 : i32, i32
  }
  func.func @transform_19(%arg0: i32) -> (i32, i32) {
    %c0_i32 = arith.constant 0 : i32
    %c0_i32_0 = arith.constant 0 : i32
    %c0_i32_1 = arith.constant 0 : i32
    return %c0_i32, %c0_i32_0 : i32, i32
  }
  func.func @transform_20(%arg0: i32) -> (i32, i32) {
    %c0_i32 = arith.constant 0 : i32
    %c0_i32_0 = arith.constant 0 : i32
    %c0_i32_1 = arith.constant 0 : i32
    return %c0_i32, %c0_i32_0 : i32, i32
  }
  func.func @transform_21(%arg0: i32) -> (i32, i32) {
    %c0_i32 = arith.constant 0 : i32
    %c0_i32_0 = arith.constant 0 : i32
    %c0_i32_1 = arith.constant 0 : i32
    return %c0_i32, %c0_i32_0 : i32, i32
  }
  func.func @transform_22(%arg0: i32) -> (i32, i32) {
    %c0_i32 = arith.constant 0 : i32
    %c0_i32_0 = arith.constant 0 : i32
    %c0_i32_1 = arith.constant 0 : i32
    return %c0_i32, %c0_i32_0 : i32, i32
  }
  func.func @transform_23(%arg0: i32) -> (i32, i32) {
    %c0_i32 = arith.constant 0 : i32
    %c0_i32_0 = arith.constant 0 : i32
    %c0_i32_1 = arith.constant 0 : i32
    return %c0_i32, %c0_i32_0 : i32, i32
  }
  func.func @transform_24(%arg0: i32) -> (i32, i32) {
    %c0_i32 = arith.constant 0 : i32
    %c0_i32_0 = arith.constant 0 : i32
    %c0_i32_1 = arith.constant 0 : i32
    return %c0_i32, %c0_i32_0 : i32, i32
  }
  func.func @transform_25(%arg0: i32) -> (i32, i32) {
    %c0_i32 = arith.constant 0 : i32
    %c0_i32_0 = arith.constant 0 : i32
    %c0_i32_1 = arith.constant 0 : i32
    return %c0_i32, %c0_i32_0 : i32, i32
  }
  func.func @transform_26(%arg0: i32) -> (i32, i32) {
    %c0_i32 = arith.constant 0 : i32
    %c0_i32_0 = arith.constant 0 : i32
    %c0_i32_1 = arith.constant 0 : i32
    return %c0_i32, %c0_i32_0 : i32, i32
  }
  func.func @transform_27(%arg0: i32) -> (i32, i32) {
    %c0_i32 = arith.constant 0 : i32
    %c0_i32_0 = arith.constant 0 : i32
    %c0_i32_1 = arith.constant 0 : i32
    return %c0_i32, %c0_i32_0 : i32, i32
  }
  func.func @transform_28(%arg0: i32) -> (i32, i32) {
    %c0_i32 = arith.constant 0 : i32
    %c0_i32_0 = arith.constant 0 : i32
    %c0_i32_1 = arith.constant 0 : i32
    return %c0_i32, %c0_i32_0 : i32, i32
  }
  func.func @transform_29(%arg0: i32) -> (i32, i32) {
    %c0_i32 = arith.constant 0 : i32
    %c0_i32_0 = arith.constant 0 : i32
    %c0_i32_1 = arith.constant 0 : i32
    return %c0_i32, %c0_i32_0 : i32, i32
  }
  func.func @transform_30(%arg0: i32) -> (i32, i32, i32) {
    %c0_i32 = arith.constant 0 : i32
    %c0_i32_0 = arith.constant 0 : i32
    %c0_i32_1 = arith.constant 0 : i32
    return %arg0, %c0_i32, %c0_i32_0 : i32, i32, i32
  }
}

</mosaic_0001>

<bundles_post_ra>
// kernel: tpu_custom_call.1
= control target key start
LH: loop header
LB: loop body
LE: loop exit
PB: predicated region body
PF: predicated region fallthrough
CT: control target
= control target key end

     0   :  { %s5760_s6 = smov 1   ;;  %s5761_s10 = smov 2   ;;  %s6703_s0 = inlined_call_operand.smem [shape: u32[31], index: -1, kind: input, shape index: {}] }
   0x1   :  { %s5821_s5 = sld [smem:[%s6703_s0]]   ;;  %s5762_s14 = smov 3  }
   0x2   :  { %s5826_s9 = sld [smem:[%s6703_s0 + %s5760_s6]]   ;;  %s5763_s18 = smov 4  }
   0x3   :  { %s5831_s13 = sld [smem:[%s6703_s0 + %s5761_s10]]   ;;  %s5764_s22 = smov 5  }
   0x4   :  { %s5836_s17 = sld [smem:[%s6703_s0 + %s5762_s14]]   ;;  %s5765_s26 = smov 6  }
   0x5   :  { %s5841_s21 = sld [smem:[%s6703_s0 + %s5763_s18]]   ;;  %s5766_s30 = smov 7  }
   0x6   :  { %s5846_s25 = sld [smem:[%s6703_s0 + %s5764_s22]]   ;;  %s5767_s4 = smov 8  }
   0x7   :  { %s5851_s29 = sld [smem:[%s6703_s0 + %s5765_s26]]   ;;  %s5768_s10 = smov 9  }
   0x8   :  { %6732 = sst [smem:[#allocation28_spill]] %s5826_s9  ;;  %s5769_s15 = smov 10  }
   0x9   :  { %s5856_s3 = sld [smem:[%s6703_s0 + %s5766_s30]]   ;;  %s5770_s20 = smov 11  }
   0xa   :  { %s5861_s8 = sld [smem:[%s6703_s0 + %s5767_s4]]   ;;  %s5771_s26 = smov 12  }
   0xb   :  { %6733 = sst [smem:[#allocation29_spill]] %s5841_s21  ;;  %s5772_s1 = smov 13  }
   0xc   :  { %6734 = sst [smem:[#allocation30_spill]] %s5846_s25  ;;  %s5773_s7 = smov 14  }
   0xd   :  { %s5866_s14 = sld [smem:[%s6703_s0 + %s5768_s10]]   ;;  %s5775_s22 = smov 16  }
   0xe   :  { %s5871_s19 = sld [smem:[%s6703_s0 + %s5769_s15]]   ;;  %s5774_s15 = smov 15  }
   0xf   :  { %6735 = sst [smem:[#allocation31_spill]] %s5856_s3  ;;  %s5776_s28 = smov 17  }
  0x10   :  { %6736 = sst [smem:[#allocation32_spill]] %s5861_s8 }
  0x11   :  { %s5876_s24 = sld [smem:[%s6703_s0 + %s5770_s20]]  }
  0x12   :  { %s5881_s30 = sld [smem:[%s6703_s0 + %s5771_s26]]  }
  0x13   :  { %6737 = sst [smem:[#allocation33_spill]] %s5866_s14 }
  0x14   :  { %s5886_s6 = sld [smem:[%s6703_s0 + %s5772_s1]]  }
  0x15   :  { %s5891_s12 = sld [smem:[%s6703_s0 + %s5773_s7]]   ;;  %s5777_s7 = smov 18  }
  0x16   :  { %s5896_s20 = sld [smem:[%s6703_s0 + %s5774_s15]]   ;;  %s5778_s15 = smov 19  }
  0x17   :  { %6738 = sst [smem:[#allocation34_spill]] %s5876_s24 }
  0x18   :  { %6739 = sst [smem:[#allocation35_spill]] %s5881_s30 }
  0x19   :  { %s5901_s27 = sld [smem:[%s6703_s0 + %s5775_s22]]   ;;  %s5779_s22 = smov 20  }
  0x1a   :  { %6740 = sst [smem:[#allocation36_spill]] %s5886_s6 }
  0x1b   :  { %6741 = sst [smem:[#allocation37_spill]] %s5891_s12 }
  0x1c   :  { %6742 = sst [smem:[#allocation38_spill]] %s5896_s20 }
  0x1d   :  { %s5906_s4 = sld [smem:[%s6703_s0 + %s5776_s28]]   ;;  %s5780_s28 = smov 21  }
  0x1e   :  { %s5911_s12 = sld [smem:[%s6703_s0 + %s5777_s7]]   ;;  %s5781_s7 = smov 22  }
  0x1f   :  { %6743 = sst [smem:[#allocation39_spill]] %s5901_s27 }
  0x20   :  { %s5916_s20 = sld [smem:[%s6703_s0 + %s5778_s15]]   ;;  %s5782_s15 = smov 23  }
  0x21   :  { %s5921_s6 = sld [smem:[%s6703_s0 + %s5779_s22]]   ;;  %s5783_s22 = smov 24  }
  0x22   :  { %s5931_s24 = sld [smem:[%s6703_s0 + %s5781_s7]]   ;;  %s5785_s7 = smov 26  }
  0x23   :  { %6744 = sst [smem:[#allocation40_spill]] %s5906_s4 }
  0x24   :  { %s5926_s4 = sld [smem:[%s6703_s0 + %s5780_s28]]   ;;  %s5784_s28 = smov 25  }
  0x25   :  { %s5941_s3 = sld [smem:[%s6703_s0 + %s5783_s22]]   ;;  %s5787_s22 = smov 28  }
  0x26   :  { %6745 = sst [smem:[#allocation41_spill]] %s5916_s20 }
  0x27   :  { %6746 = sst [smem:[#allocation42_spill]] %s5921_s6 }
  0x28   :  { %s5936_s20 = sld [smem:[%s6703_s0 + %s5782_s15]]   ;;  %s5786_s15 = smov 27  }
  0x29   :  { %s5951_s14 = sld [smem:[%s6703_s0 + %s5785_s7]]   ;;  %s5789_s7 = smov 30  }
  0x2a   :  { %6747 = sst [smem:[#allocation43_spill]] %s5926_s4 }
  0x2b   :  { %6749 = sst [smem:[#allocation45_spill]] %s5941_s3 }
  0x2c   :  { %s5946_s4 = sld [smem:[%s6703_s0 + %s5784_s28]]   ;;  %s5788_s28 = smov 29  }
  0x2d   :  { %s5961_s3 = sld [smem:[%s6703_s0 + %s5787_s22]]  }
  0x2e   :  { %6748 = sst [smem:[#allocation44_spill]] %s5936_s20 }
  0x2f   :  { %s5956_s20 = sld [smem:[%s6703_s0 + %s5786_s15]]  }
  0x30   :  { %s5971_s8 = sld [smem:[%s6703_s0 + %s5789_s7]]  }
  0x32   :  { %6750 = sst [smem:[#allocation46_spill]] %s5946_s4 }
  0x33   :  { %6752 = sst [smem:[#allocation48_spill]] %s5961_s3 }
  0x34   :  { %s5966_s4 = sld [smem:[%s6703_s0 + %s5788_s28]]  }
  0x35   :  { %6751 = sst [smem:[#allocation47_spill]] %s5956_s20 }
  0x36   :  { %6754 = sst [smem:[#allocation50_spill]] %s5971_s8 }
  0x3a   :  { %6753 = sst [smem:[#allocation49_spill]] %s5966_s4 }
  0x3b   :  { %66 = vsyncpa [#allocation3], 0 }
  0x3c   :  { %68 = vsyncpa [#allocation3 + $0x1], 0 }
  0x3d   :  { %69 = vsyncpa [#allocation6], 0 }
  0x3e   :  { %71 = vsyncpa [#allocation6 + $0x1], 0 }
  0x3f   :  { %72 = vsyncpa [#allocation9], 0 }
  0x40   :  { %74 = vsyncpa [#allocation9 + $0x1], 0 }
  0x41   :  { %75 = vsyncpa [#allocation12], 0 }
  0x42   :  { %76 = vsyncpa [#allocation15], 0 }
  0x43   :  { %77 = vsyncpa [#allocation18], 0 }
  0x44   :  { %78 = vsyncpa [#allocation4], 0 }
  0x45   :  { %80 = vsyncpa [#allocation4 + $0x1], 0  ;;  %s5973_s15 = smov 0   ;;  %s5975_s16 = smov 0  }
  0x46   :  { %s5977_s18 = smov 0   ;;  %s5979_s22 = smov 0  }
  0x47 LB: > { %s6755_s9 = sld [smem:[#allocation28_spill]]  ;;  %s5790_s0 = smov [#allocation10]   ;;  %s5746_s15 = sphi %s5973_s15, %s6818_s15   ;;  %s5758_s22 = sphi %s5979_s22, %s6816_s22   ;;  %s5754_s18 = sphi %s5977_s18, %s6820_s18   ;;  %s5750_s16 = sphi %s5975_s16, %s6819_s16  }
  0x48   : > { %6756 = sst [smem:[#allocation51_spill]] %s5746_s15  ;;  %s803_s23 = sshll.u32 %s5790_s0, 4  ;;  %s804_s23 = int_to_ptr.vmem [resolvable:$true] %s803_s23 }
  0x49   : > { %s5994_s26 = sadd.s32 4294967295, %s5758_s22   ;;  %p4812_p0 = scmp.ge.s32.totalorder %s5758_s22, 1 }
  0x4a   : > { %p6718_p1 = scmp.eq.s32.totalorder %s5994_s26, 0  ;;  %p767_p2 = scmp.lt.s32.totalorder %s5758_s22, 3 }
  0x4b   : > { %s5791_s1 = smov [#allocation11]   ;;  %s5792_s10 = smov [#allocation14]  }
  0x4c   : > { %p5999_p3 = pnand %p4812_p0, %p767_p2  ;;  %s825_s2 = sshll.u32 %s5791_s1, 4  ;;  %s6012_s2 = int_to_ptr.vmem [resolvable:$true] %s825_s2 }
  0x4d   : > { %s857_s11 = sshll.u32 %s5792_s10, 4  ;;  %s5413_s8 = scalar_lea.vmem %s804_s23, 512  ;;  %s6014_s11 = int_to_ptr.vmem [resolvable:$true] %s857_s11 }
  0x4e   : > { %s6757_s28 = scalar_select %p5999_p3, 1, 0 }
  0x4f   : > { %p5228_p5 = pneg %p5999_p3  ;;  %p5414_p8 = scmp.ne.s32.totalorder %s804_s23, %s5413_s8 }
  0x50   : > { %p5421_p11 = scmp.lt.s32.totalorder %s804_s23, %s804_s23  ;;  %p5422_p12 = scmp.lt.s32.totalorder %s5413_s8, %s5413_s8 }
  0x51   : > { %p6008_p6 = pnand %p5228_p5, %p6718_p1 }
  0x52   : > { %p5423_p13 = por %p5422_p12, %p5421_p11 }
  0x53   : > { %s6758_s7 = scalar_select %p6008_p6, 1, 0 }
  0x54   : > { %p6018_p7 = pneg %p6008_p6 }
  0x56   : > { %s6759_s0 = scalar_select %p6018_p7, 1, 0 }
  0x57   : > { %p5416_p9 = pnand %p5414_p8, %p6018_p7 }
  0x59   : > { %p5417_p10 = pneg %p5416_p9 }
  0x5b   : > { %p5424_p0 = pnand %p5423_p13, %p5417_p10 }
  0x5d   : > { %5427 = shalt.err (!%p5424_p0)
}
  0x5e   : > { %s6706_s1 = smov 128   ;;  %s6760_s30 = sld [smem:[#allocation35_spill]] }
  0x5f   : > { %s6709_s10 = smov 8   ;;  %s5439_s4 = scalar_lea.vmem %s6012_s2, 512 }
  0x60   : > { %p5440_p2 = scmp.ne.s32.totalorder %s6012_s2, %s5439_s4  ;;  %p5447_p9 = scmp.lt.s32.totalorder %s6012_s2, %s6012_s2 }
  0x61   : > { %p5448_p10 = scmp.lt.s32.totalorder %s5439_s4, %s5439_s4 }
  0x62   : > { %p5442_p5 = pnand %p5440_p2, %p6018_p7 }
  0x63   : > { %p5449_p11 = por %p5448_p10, %p5447_p9 }
  0x64   : > { %5231 = dma.hbm_to_vmem [thread:$0]  (!%p6008_p6), %s6760_s30, 512, %s804_s23, [#allocation9], %s6706_s1, %s6706_s1, %s6709_s10  }
  0x65   : > { %p5443_p8 = pneg %p5442_p5 }
  0x67   : > { %p5450_p12 = pnand %p5449_p11, %p5443_p8 }
  0x69   : > { %5453 = shalt.err (!%p5450_p12)
}
  0x6a   : > { %s6761_s27 = sld [smem:[#allocation39_spill]]  ;;  %s5465_s8 = scalar_lea.vmem %s6014_s11, 512 }
  0x6b   : > { %p5466_p13 = scmp.ne.s32.totalorder %s6014_s11, %s5465_s8  ;;  %p5473_p5 = scmp.lt.s32.totalorder %s6014_s11, %s6014_s11 }
  0x6c   : > { %p5474_p8 = scmp.lt.s32.totalorder %s5465_s8, %s5465_s8 }
  0x6d   : > { %p5468_p0 = pnand %p5466_p13, %p6018_p7 }
  0x6e   : > { %p5475_p9 = por %p5474_p8, %p5473_p5 }
  0x6f   : > { %p5469_p2 = pneg %p5468_p0 }
  0x70   : > { %5234 = dma.hbm_to_vmem [thread:$0]  (!%p6008_p6), %s6761_s27, 512, %s6012_s2, [#allocation12], %s6706_s1, %s6706_s1, %s6709_s10  }
  0x71   : > { %p5476_p10 = pnand %p5475_p9, %p5469_p2 }
  0x73   : > { %5479 = shalt.err (!%p5476_p10)
}
  0x74   : > { %s6762_s6 = sld [smem:[#allocation42_spill]]  ;;  %s4811_s4 = sadd.s32 4294967294, %s5758_s22  }
  0x75   : > { %s6058_s23 = sadd.s32 1, %s5758_s22   ;;  %s93_s2 = sadd.s32 1, %s5754_s18 }
  0x76   : > { %6763 = sst [smem:[#allocation52_spill]] %s6058_s23  ;;  %s90_s8 = ssub.s32 %s5758_s22, %s6058_s23 }
  0x77   : > { %p100_p11 = scmp.ne.s32.totalorder %s5754_s18, %s5750_s16  ;;  %p91_p12 = scmp.eq.s32.totalorder %s90_s8, 0 }
  0x78   : > { %p101_p13 = scmp.eq.s32.totalorder %s5758_s22, 0  ;;  %p106_p0 = scmp.ne.s32.totalorder %s5750_s16, %s5746_s15 }
  0x79   : > { %p754_p2 = scmp.eq.s32.totalorder %s5994_s26, 1  ;;  %p760_p10 = scmp.eq.s32.totalorder %s4811_s4, 1 }
  0x7a   : > { %5240 = dma.hbm_to_vmem [thread:$0]  (!%p6008_p6), %s6762_s6, 512, %s6014_s11, [#allocation15], %s6706_s1, %s6706_s1, %s6709_s10  }
  0x7b   : > { %s6070_s27 = scalar_select %p91_p12, %s5754_s18, %s93_s2  }
  0x7c   : > { %p102_p5 = por %p101_p13, %p100_p11  ;;  %p6074_p8 = por %p6718_p1, %p106_p0 }
  0x7d   : > { %6764 = sst [smem:[#allocation53_spill]] %s6070_s27  ;;  %p6078_p9 = por %p754_p2, %p100_p11 }
  0x7e   : > { %s6765_s11 = scalar_select %p6074_p8, 1, 0 }
  0x7f   : > { %s6766_s1 = scalar_select %p6078_p9, 1, 0 }
  0x80   : > { %p5270_p4 = scmp.lt.s32.totalorder %s5758_s22, 2  ;;  %s6714_s8 = sand.u32 1, %s5754_s18  }
  0x81   : > { %6767 = sst [smem:[#allocation54_spill]] %s6766_s1  ;;  %p6084_p3 = por %p760_p10, %p106_p0 }
  0x82   : > { %s6090_s2 = sshll.u32 %s6714_s8, 3  ;;  %s6093_s6 = sshll.u32 %s5758_s22, 7 }
  0x83   : > { %s6768_s10 = scalar_select %p6084_p3, 1, 0 }
  0x84   : > { %p6095_p11 = pnand %p5270_p4, %p102_p5  ;;  %s6721_s4 = sand.u32 1, %s5758_s22  }
  0x85   : > { %6769 = sst [smem:[#allocation55_spill]] %s6768_s10  ;;  %s6102_s27 = scalar_lea.hbm %s6755_s9, %s6093_s6 }
  0x86   : > { %s6770_s30 = scalar_select %p6095_p11, 1, 0 }
  0x87   : > { %s940_s23 = scalar_lea.vmem [#allocation5], %s6090_s2  ;;  %s6107_s8 = scalar_lea.sflag [#allocation6], %s6721_s4 }
  0x88   : > { %s947_s10 = sshll.u32 %s940_s23, 4  ;;  %s5480_s15 = scalar_lea.hbm %s6102_s27, 128  ;;  %s948_s10 = int_to_ptr.vmem [resolvable:$true] %s947_s10 }
  0x89   : > { %p5481_p12 = scmp.ne.s32.totalorder %s6102_s27, %s5480_s15  ;;  %p6113_p4 = pneg %p6095_p11 }
  0x8a   : > { %s5485_s20 = scalar_lea.hbm %s6755_s9, 256  ;;  %p5486_p2 = scmp.lt.s32.totalorder %s6102_s27, %s6755_s9 }
  0x8b   : > { %s6771_s1 = scalar_select %p6113_p4, 1, 0 }
  0x8c   : > { %p5483_p13 = pnand %p6113_p4, %p5481_p12  ;;  %p5487_p5 = scmp.lt.s32.totalorder %s5485_s20, %s5480_s15 }
  0x8e   : > { %p5484_p0 = pneg %p5483_p13  ;;  %p5488_p10 = por %p5487_p5, %p5486_p2 }
  0x90   : > { %p5489_p1 = pnand %p5488_p10, %p5484_p0 }
  0x92   : > { %5492 = shalt.err (!%p5489_p1)
}
  0x93   : > { %s5493_s23 = scalar_lea.vmem %s948_s10, 128  ;;  %s5795_s4 = smov [#allocation5]  }
  0x94   : > { %p5494_p3 = scmp.ne.s32.totalorder %s948_s10, %s5493_s23  ;;  %s5498_s3 = sshll.u32 %s5795_s4, 4  ;;  %s5499_s3 = int_to_ptr.vmem [resolvable:$false] %s5498_s3 }
  0x95   : > { %s5500_s25 = scalar_lea.vmem %s5499_s3, 256  ;;  %p5501_p6 = scmp.lt.s32.totalorder %s948_s10, %s5499_s3 }
  0x96   : > { %p5496_p9 = pnand %p5494_p3, %p6113_p4  ;;  %p5502_p7 = scmp.lt.s32.totalorder %s5500_s25, %s5493_s23 }
  0x98   : > { %p5497_p8 = pneg %p5496_p9  ;;  %p5503_p12 = por %p5502_p7, %p5501_p6 }
  0x9a   : > { %p5504_p13 = pnand %p5503_p12, %p5497_p8 }
  0x9c   : > { %5507 = shalt.err (!%p5504_p13)
}
  0x9d   : > { %5253 = dma.hbm_to_vmem [thread:$0]  (!%p6095_p11), %s6102_s27, 128, %s948_s10, %s6107_s8  }
  0x9e   : > { %s5796_s20 = smov [#allocation13]   ;;  %s5797_s9 = smov [#allocation16]  }
  0x9f   : > { %s841_s15 = sshll.u32 %s5796_s20, 4  ;;  %s873_s21 = sshll.u32 %s5797_s9, 4  ;;  %s842_s15 = int_to_ptr.vmem [resolvable:$true] %s841_s15  ;;  %s874_s21 = int_to_ptr.vmem [resolvable:$true] %s873_s21 }
  0xa0   : > { %s5519_s4 = scalar_lea.vmem %s842_s15, 512  ;;  %p6772_p3 = scmp.ne.s32.totalorder %s6759_s0, 0 }
  0xa1   : > { %p5520_p1 = scmp.ne.s32.totalorder %s842_s15, %s5519_s4  ;;  %p5527_p6 = scmp.lt.s32.totalorder %s842_s15, %s842_s15 }
  0xa2   : > { %p5528_p7 = scmp.lt.s32.totalorder %s5519_s4, %s5519_s4 }
  0xa3   : > { %p5522_p9 = pnand %p5520_p1, %p6772_p3 }
  0xa4   : > { %p5529_p8 = por %p5528_p7, %p5527_p6 }
  0xa5   : > { %p5523_p0 = pneg %p5522_p9 }
  0xa7   : > { %p5530_p2 = pnand %p5529_p8, %p5523_p0 }
  0xa9   : > { %5533 = shalt.err (!%p5530_p2)
}
  0xaa   : > { %p6773_p5 = scmp.ne.s32.totalorder %s6758_s7, 0  ;;  %s6774_s25 = smov 8  }
  0xab   : > { %s6775_s3 = smov 128   ;;  %s5545_s9 = scalar_lea.vmem %s874_s21, 512 }
  0xac   : > { %5237 = dma.hbm_to_vmem [thread:$0]  (!%p6773_p5), %s5911_s12, 512, %s842_s15, [#allocation12], %s6775_s3, %s6775_s3, %s6774_s25  }
  0xad   : > { %p5546_p10 = scmp.ne.s32.totalorder %s874_s21, %s5545_s9  ;;  %p5553_p1 = scmp.lt.s32.totalorder %s874_s21, %s874_s21 }
  0xae   : > { %p5554_p9 = scmp.lt.s32.totalorder %s5545_s9, %s5545_s9 }
  0xaf   : > { %p5548_p12 = pnand %p5546_p10, %p6772_p3 }
  0xb0   : > { %p5555_p11 = por %p5554_p9, %p5553_p1 }
  0xb1   : > { %p5549_p13 = pneg %p5548_p12 }
  0xb3   : > { %p5556_p4 = pnand %p5555_p11, %p5549_p13 }
  0xb5   : > { %5559 = shalt.err (!%p5556_p4)
}
  0xb6   : > { %5243 = dma.hbm_to_vmem [thread:$0]  (!%p6773_p5), %s5931_s24, 512, %s874_s21, [#allocation15], %s6775_s3, %s6775_s3, %s6774_s25  }
  0xb7   : > { %s5798_s27 = smov [#allocation17]   ;;  %s6146_s23 = scalar_lea.hbm %s5821_s5, %s6093_s6 }
  0xb8   : > { %s895_s10 = sshll.u32 %s5798_s27, 4  ;;  %s896_s10 = int_to_ptr.vmem [resolvable:$true] %s895_s10 }
  0xb9   : > { %s5571_s20 = scalar_lea.vmem %s896_s10, 512  ;;  %p5579_p6 = scmp.lt.s32.totalorder %s896_s10, %s896_s10 }
  0xba   : > { %p5572_p0 = scmp.ne.s32.totalorder %s896_s10, %s5571_s20  ;;  %p5580_p7 = scmp.lt.s32.totalorder %s5571_s20, %s5571_s20 }
  0xbc   : > { %p5574_p11 = pnand %p5572_p0, %p6772_p3  ;;  %p5581_p8 = por %p5580_p7, %p5579_p6 }
  0xbe   : > { %p5575_p4 = pneg %p5574_p11 }
  0xc0   : > { %p5582_p2 = pnand %p5581_p8, %p5575_p4 }
  0xc2   : > { %5585 = shalt.err (!%p5582_p2)
}
  0xc3   : > { %5246 = dma.hbm_to_vmem [thread:$0]  (!%p6773_p5), %s5951_s14, 512, %s896_s10, [#allocation18], %s6775_s3, %s6775_s3, %s6774_s25  }
  0xc4   : > { %s922_s21 = scalar_lea.vmem [#allocation2], %s6090_s2  ;;  %s6159_s15 = scalar_lea.hbm %s5831_s13, %s6093_s6 }
  0xc5   : > { %s929_s0 = sshll.u32 %s922_s21, 4  ;;  %s6776_s7 = sand.u32 1, %s5754_s18   ;;  %s930_s0 = int_to_ptr.vmem [resolvable:$true] %s929_s0 }
  0xc6   : > { %s919_s4 = scalar_lea.sflag [#allocation3], %s6776_s7  ;;  %s5586_s9 = scalar_lea.hbm %s6146_s23, 128 }
  0xc7   : > { %p5587_p3 = scmp.ne.s32.totalorder %s6146_s23, %s5586_s9  ;;  %p6777_p10 = scmp.ne.s32.totalorder %s6771_s1, 0 }
  0xc8   : > { %s5591_s27 = scalar_lea.hbm %s5821_s5, 256  ;;  %p5592_p1 = scmp.lt.s32.totalorder %s6146_s23, %s5821_s5 }
  0xc9   : > { %p5589_p12 = pnand %p5587_p3, %p6777_p10  ;;  %p5593_p9 = scmp.lt.s32.totalorder %s5591_s27, %s5586_s9 }
  0xcb   : > { %p5590_p13 = pneg %p5589_p12  ;;  %p5594_p0 = por %p5593_p9, %p5592_p1 }
  0xcd   : > { %p5595_p11 = pnand %p5594_p0, %p5590_p13 }
  0xcf   : > { %5598 = shalt.err (!%p5595_p11)
}
  0xd0   : > { %s5599_s20 = scalar_lea.vmem %s930_s0, 128  ;;  %s5799_s25 = smov [#allocation2]  }
  0xd1   : > { %p5600_p5 = scmp.ne.s32.totalorder %s930_s0, %s5599_s20  ;;  %s5604_s3 = sshll.u32 %s5799_s25, 4  ;;  %s5605_s3 = int_to_ptr.vmem [resolvable:$false] %s5604_s3 }
  0xd2   : > { %s5606_s10 = scalar_lea.vmem %s5605_s3, 256  ;;  %p5607_p7 = scmp.lt.s32.totalorder %s930_s0, %s5605_s3 }
  0xd3   : > { %p5602_p4 = pnand %p5600_p5, %p6777_p10  ;;  %p5608_p8 = scmp.lt.s32.totalorder %s5606_s10, %s5599_s20 }
  0xd5   : > { %p5603_p6 = pneg %p5602_p4  ;;  %p5609_p2 = por %p5608_p8, %p5607_p7 }
  0xd7   : > { %p5610_p3 = pnand %p5609_p2, %p5603_p6 }
  0xd9   : > { %5613 = shalt.err (!%p5610_p3)
}
  0xda   : > { %p6778_p12 = scmp.ne.s32.totalorder %s6770_s30, 0  ;;  %s958_s21 = scalar_lea.vmem [#allocation7], %s6090_s2 }
  0xdb   : > { %s965_s7 = sshll.u32 %s958_s21, 4  ;;  %s6178_s9 = scalar_lea.hbm %s5836_s17, %s6093_s6  ;;  %s966_s7 = int_to_ptr.vmem [resolvable:$true] %s965_s7 }
  0xdc   : > { %5250 = dma.hbm_to_vmem [thread:$0]  (!%p6778_p12), %s6146_s23, 128, %s930_s0, %s919_s4  }
  0xdd   : > { %s5614_s27 = scalar_lea.hbm %s6159_s15, 128  ;;  %s5619_s20 = scalar_lea.hbm %s5831_s13, 256 }
  0xde   : > { %p5615_p13 = scmp.ne.s32.totalorder %s6159_s15, %s5614_s27  ;;  %p5620_p0 = scmp.lt.s32.totalorder %s6159_s15, %s5831_s13 }
  0xdf   : > { %p5621_p11 = scmp.lt.s32.totalorder %s5619_s20, %s5614_s27 }
  0xe0   : > { %p5617_p1 = pnand %p5615_p13, %p6777_p10 }
  0xe1   : > { %p5622_p5 = por %p5621_p11, %p5620_p0 }
  0xe2   : > { %p5618_p9 = pneg %p5617_p1 }
  0xe4   : > { %p5623_p4 = pnand %p5622_p5, %p5618_p9 }
  0xe6   : > { %5626 = shalt.err (!%p5623_p4)
}
  0xe7   : > { %s5627_s25 = scalar_lea.vmem %s966_s7, 128  ;;  %s5800_s23 = smov [#allocation7]  }
  0xe8   : > { %p5628_p6 = scmp.ne.s32.totalorder %s966_s7, %s5627_s25  ;;  %s5632_s6 = sshll.u32 %s5800_s23, 4  ;;  %s5633_s6 = int_to_ptr.vmem [resolvable:$false] %s5632_s6 }
  0xe9   : > { %s5634_s0 = scalar_lea.vmem %s5633_s6, 256  ;;  %p5635_p2 = scmp.lt.s32.totalorder %s966_s7, %s5633_s6 }
  0xea   : > { %p5630_p7 = pnand %p5628_p6, %p6777_p10  ;;  %p5636_p3 = scmp.lt.s32.totalorder %s5634_s0, %s5627_s25 }
  0xec   : > { %p5631_p8 = pneg %p5630_p7  ;;  %p5637_p13 = por %p5636_p3, %p5635_p2 }
  0xee   : > { %p5638_p1 = pnand %p5637_p13, %p5631_p8 }
  0xf0   : > { %5641 = shalt.err (!%p5638_p1)
}
  0xf1   : > { %5256 = dma.hbm_to_vmem [thread:$0]  (!%p6778_p12), %s6159_s15, 128, %s966_s7, %s6107_s8  }
  0xf2   : > { %s976_s4 = scalar_lea.vmem [#allocation8], %s6090_s2  ;;  %s6779_s10 = sand.u32 1, %s5758_s22  }
  0xf3   : > { %s983_s3 = sshll.u32 %s976_s4, 4  ;;  %s973_s21 = scalar_lea.sflag [#allocation9], %s6779_s10  ;;  %s984_s3 = int_to_ptr.vmem [resolvable:$true] %s983_s3 }
  0xf4   : > { %s5642_s27 = scalar_lea.hbm %s6178_s9, 128  ;;  %s5647_s20 = scalar_lea.hbm %s5836_s17, 256 }
  0xf5   : > { %p5643_p9 = scmp.ne.s32.totalorder %s6178_s9, %s5642_s27  ;;  %p5648_p5 = scmp.lt.s32.totalorder %s6178_s9, %s5836_s17 }
  0xf6   : > { %p5649_p4 = scmp.lt.s32.totalorder %s5647_s20, %s5642_s27 }
  0xf7   : > { %p5645_p0 = pnand %p5643_p9, %p6777_p10 }
  0xf8   : > { %p5650_p6 = por %p5649_p4, %p5648_p5 }
  0xf9   : > { %p5646_p11 = pneg %p5645_p0 }
  0xfb   : > { %p5651_p7 = pnand %p5650_p6, %p5646_p11 }
  0xfd   : > { %5654 = shalt.err (!%p5651_p7)
}
  0xfe   : > { %s5655_s25 = scalar_lea.vmem %s984_s3, 128  ;;  %s5801_s8 = smov [#allocation8]  }
  0xff   : > { %p5656_p8 = scmp.ne.s32.totalorder %s984_s3, %s5655_s25  ;;  %s5660_s2 = sshll.u32 %s5801_s8, 4  ;;  %s5661_s2 = int_to_ptr.vmem [resolvable:$false] %s5660_s2 }
 0x100   : > { %s5662_s15 = scalar_lea.vmem %s5661_s2, 256  ;;  %p5663_p13 = scmp.lt.s32.totalorder %s984_s3, %s5661_s2 }
 0x101   : > { %p5658_p2 = pnand %p5656_p8, %p6777_p10  ;;  %p5664_p1 = scmp.lt.s32.totalorder %s5662_s15, %s5655_s25 }
 0x103   : > { %p5659_p3 = pneg %p5658_p2  ;;  %p5665_p9 = por %p5664_p1, %p5663_p13 }
 0x105   : > { %p5666_p0 = pnand %p5665_p9, %p5659_p3 }
 0x107   : > { %5669 = shalt.err (!%p5666_p0)
}
 0x108   : > { %5259 = dma.hbm_to_vmem [thread:$0]  (!%p6778_p12), %s6178_s9, 128, %s984_s3, %s973_s21  }
 0x109   : > { %p6780_p11 = scmp.ne.s32.totalorder %s6757_s28, 0 }
 0x10a   : > { %s6211_s1 = sand.u32 (!%p6780_p11), 1, %s5750_s16   ;;  %p6781_p10 = scmp.ne.s32.totalorder (!%p6780_p11), %s6765_s11, 0 }
 0x10b   : > { %992 = sbr.rel (%p6780_p11) target bundleno = 4520 (0x11a8), region = 140  ;;  %s6214_s7 = sshll.u32 (!%p6780_p11), %s6211_s1, 3 }
 0x10c   : > { %s995_s23 = scalar_lea.sflag (!%p6780_p11), [#allocation3], %s6211_s1  ;;  %s998_s6 = scalar_lea.vmem (!%p6780_p11), [#allocation2], %s6214_s7 }
 0x110   : > { %5713 = dma.done.wait (%p6781_p10), %s995_s23, 128  }
 0x111   : > { %5715 = vsyncadd (%p6781_p10), %s995_s23, 4294967168  ;;  %s1003_s30 = sand.u32 1, %s5994_s26   ;;  %s1007_s9 = scalar_lea.vmem [#allocation5], %s6214_s7 }
 0x112   : > { %s1004_s28 = scalar_lea.sflag [#allocation6], %s1003_s30 }
 0x113   : > { %5717 = dma.done.wait (%p6781_p10), %s1004_s28, 256  }
 0x114   : > { %5719 = vsyncadd (%p6781_p10), %s1004_s28, 4294967040  ;;  %s1016_s0 = scalar_lea.vmem [#allocation7], %s6214_s7  ;;  %s1022_s4 = scalar_lea.sflag [#allocation9], %s1003_s30 }
 0x115   : > { %s1025_s3 = scalar_lea.vmem [#allocation8], %s6214_s7 }
 0x116   : > { %5721 = dma.done.wait (%p6781_p10), %s1022_s4, 128  }
 0x117   : > { %5723 = vsyncadd (%p6781_p10), %s1022_s4, 4294967168  ;;  %p6782_p12 = scmp.eq.s32.totalorder %s5994_s26, 0 }
 0x119   : > { %5725 = dma.done.wait (%p6782_p12), [#allocation9], 512   ;;  %p6783_p5 = pmov %p6782_p12 }
 0x11b   : > { %5727 = vsyncadd (%p6783_p5), [#allocation9], 4294966784  ;;  %p6784_p4 = pmov %p6783_p5 }
 0x11d   : > { %5729 = dma.done.wait (%p6784_p4), [#allocation12], 1024   ;;  %p6785_p6 = pmov %p6784_p4 }
 0x11e   : > { %p6786_p7 = pmov %p6784_p4 }
 0x11f   : > { %5731 = vsyncadd (%p6785_p6), [#allocation12], 4294966272 }
 0x120   : > { %5733 = dma.done.wait (%p6786_p7), [#allocation15], 1024   ;;  %p6787_p8 = pmov %p6784_p4 }
 0x121   : > { %p6788_p2 = pmov %p6784_p4 }
 0x122   : > { %5735 = vsyncadd (%p6787_p8), [#allocation15], 4294966272 }
 0x123   : > { %5737 = dma.done.wait (%p6788_p2), [#allocation18], 512   ;;  %p6789_p3 = pmov %p6788_p2 }
 0x124   : > { %vm1149_vm0 = vcmask 261120   ;;  %v6250_v0 = vld [vmem:[%s998_s6] sm:$0xff]  ;;  %v1191_v7 = vld [vmem:[%s5851_s29 + $0x18] sm:$0xff]  ;;  %v5802_v9 = vmov 0.0   ;;  %v1190_v10 = vld [vmem:[%s5851_s29 + $0x10] sm:$0xff]  ;;  %vm5803_vm1 = vmmov 0   ;;  %v1450_v47 = vlaneseq }
 0x125   : > { %5739 = vsyncadd (%p6789_p3), [#allocation18], 4294966784  ;;  %v1150_v1 = vsel %vm1149_vm0, %v6250_v0, 0.0  ;;  %v1357_v8 = vld [vmem:[%s5871_s19 + $0x18] sm:$0xff]  ;;  %4996 = vmatprep.subr.mxu1 %v5802_v9  ;;  %5018 = vmatprep.subr.mxu0 %v5802_v9  ;;  %v1356_v11 = vld [vmem:[%s5871_s19 + $0x10] sm:$0xff]  ;;  %s6790_s11 = sld [smem:[#allocation29_spill]] }
 0x126   : > { %1151 = vadd.xlane.f32.xlu0 %v1150_v1  ;;  %4997 = vmatpush3.msra.mxu1 %v1191_v7  ;;  %v1189_v12 = vld [vmem:[%s5851_s29 + $0x8] sm:$0xff]  ;;  %v1188_v14 = vld [vmem:[%s5851_s29] sm:$0xff]  ;;  %s6791_s10 = sld [smem:[#allocation30_spill]]  ;;  %s5804_s25 = smov 104   ;;  %v5807_v45 = vmov 1983009808  }
 0x127   : > { %5019 = vmatpush3.msra.mxu0 %v1357_v8  ;;  %4998 = vmatprep.subr.mxu1 %v5802_v9  ;;  %v1355_v13 = vld [vmem:[%s5871_s19 + $0x8] sm:$0xff]  ;;  %v1354_v15 = vld [vmem:[%s5871_s19] sm:$0xff]  ;;  %s6792_s21 = sld [smem:[#allocation32_spill]]  ;;  %s5805_s8 = smov 120   ;;  %v1448_v46 = vunpack.c.l.s4 %v5807_v45  ;;  %v5808_v48 = vmov 1934713408  }
 0x128   : > { %5020 = vmatprep.subr.mxu0 %v5802_v9  ;;  %4999 = vmatpush3.msra.mxu1 %v1190_v10  ;;  %s6793_s27 = sld [smem:[#allocation33_spill]]  ;;  %s5806_s2 = smov 112   ;;  %v1480_v49 = vunpack.c.l.s4 %v5808_v48  ;;  %v1451_v51 = vshrl.u32 %v1450_v47, 7  ;;  %vm1873_vm4 = vcmask 64512   ;;  %vm2667_vm6 = vcmask 130048  }
 0x129   : > { %5021 = vmatpush3.msra.mxu0 %v1356_v11  ;;  %5000 = vmatprep.subr.mxu1 %v5802_v9  ;;  %s6794_s20 = sld [smem:[#allocation31_spill]]  ;;  %v1449_v50 = vunpack.c.0.s8 %v1448_v46  ;;  %s5809_s23 = smov 16   ;;  %vm2669_vm7 = vcmask 195584   ;;  %vm4498_vm13 = vcmask 523264  }
 0x12a   : > { %5022 = vmatprep.subr.mxu0 %v5802_v9  ;;  %5001 = vmatpush3.msra.mxu1 %v1189_v12  ;;  %v1481_v54 = vunpack.c.0.s8 %v1480_v49  ;;  %s6795_s15 = sld [smem:[#allocation34_spill]]  ;;  %s5810_s30 = smov 8  }
 0x12b   : > { %5023 = vmatpush3.msra.mxu0 %v1355_v13  ;;  %5002 = vmatprep.subr.mxu1 %v5802_v9  ;;  %v4840_v25 = vld [vmem:[%s6790_s11] ss:$0 sm:$0xff]  ;;  %v6307_v55 = vsub.s32 %v1449_v50, %v1451_v51  ;;  %s6796_s6 = sld [smem:[#allocation36_spill]]  ;;  %s5811_s28 = smov 24  }
 0x12c   : > { %5024 = vmatprep.subr.mxu0 %v5802_v9  ;;  %5003 = vmatpush3.msra.mxu1 %v1188_v14  ;;  %v4841_v27 = vld [vmem:[%s6791_s10] ss:$0 sm:$0xff]  ;;  %v6309_v61 = vsub.s32 %v1481_v54, %v1451_v51  ;;  %s6799_s4 = sld [smem:[#allocation38_spill]] }
 0x12d   : > { %5004 = vmatprep.mubr.msk.f32.mxu1 %vm5803_vm1, %v5802_v9  ;;  %5007 = vmatprep.subr.mxu1 %v5802_v9  ;;  %v1276_v30 = vld [vmem:[%s6792_s21 + $0x18] sm:$0xff]  ;;  %v1275_v31 = vld [vmem:[%s6792_s21 + $0x10] sm:$0xff]  ;;  %v1274_v32 = vld [vmem:[%s6792_s21 + $0x8] sm:$0xff]  ;;  %s6800_s11 = sld [smem:[#allocation40_spill]] }
 0x12e   : > { %5025 = vmatpush3.msra.mxu0 %v1354_v15  ;;  %5026 = vmatprep.mubr.msk.f32.mxu0 %vm5803_vm1, %v5802_v9  ;;  %v1273_v33 = vld [vmem:[%s6792_s21] sm:$0xff]  ;;  %s6802_s10 = sld [smem:[#allocation44_spill]] }
 0x12f   : > { %5039 = vmatprep.subr.mxu0 %v5802_v9  ;;  %v4844_v38 = vld [vmem:[%s6793_s27] ss:$0 sm:$0xff]  ;;  %s6803_s27 = sld [smem:[#allocation48_spill]] }
 0x130   : > { %v4842_v41 = vld [vmem:[%s6794_s20] ss:$0 sm:$0xff]  ;;  %s6804_s20 = sld [smem:[#allocation45_spill]] }
 0x1af   : > { %v1152_v2 = vpop.xlane.xlu0 %1151 }
 0x1b0   : > { %v1154_v3 = vmul.f32 0.03125, %v1152_v2 }
 0x1b2   : > { %v1155_v4 = vsub.f32 %v6250_v0, %v1154_v3 }
 0x1b4   : > { %v1156_v5 = vmul.f32 %v1155_v4, %v1155_v4 }
 0x1b6   : > { %v1157_v6 = vsel %vm1149_vm0, %v1156_v5, 0.0 }
 0x1b7   : > { %1158 = vadd.xlane.f32.xlu0 %v1157_v6 }
 0x240   : > { %v1159_v16 = vpop.xlane.xlu0 %1158 }
 0x241   : > { %v1160_v17 = vmul.f32 0.032258064, %v1159_v16 }
 0x243   : > { %5358 = vrsqrt.f32 %v1160_v17  ;;  %vm1163_vm2 = vcmp.eq.f32.partialorder %v1160_v17, inf  ;;  %v1166_v20 = vand.u32 2147483648, %v1160_v17  ;;  %vm1165_vm3 = vcmp.eq.f32.partialorder %v1160_v17, 0.0 }
 0x250   : > { %v5359_v18 = vpop.eup %5358 }
 0x251   : > { %v1162_v19 = vmul.f32 %v5359_v18, %v1160_v17 }
 0x253   : > { %v1164_v21 = vsel %vm1163_vm2, %v1160_v17, %v1162_v19 }
 0x254   : > { %v1167_v22 = vsel %vm1165_vm3, %v1166_v20, %v1164_v21 }
 0x255   : > { %v1168_v23 = vadd.f32 1e-06, %v1167_v22 }
 0x257   : > { %5360 = vrcp.f32 %v1168_v23 }
 0x264   : > { %v5361_v24 = vpop.eup %5360 }
 0x265   : > { %v1172_v26 = vmul.f32 %v5361_v24, %v1155_v4 }
 0x267   : > { %v1179_v28 = vmul.f32 %v4840_v25, %v1172_v26 }
 0x269   : > { %v1187_v29 = vadd.f32 %v4841_v27, %v1179_v28 }
 0x26b   : > { %5005 = vmatmul.mubr.msk.f32.vlgmr.msra.gmra.mxu1 %vm1149_vm0, %v1187_v29  ;;  %5027 = vmatmul.mubr.msk.f32.vlgmr.msra.gmra.mxu0 %vm1149_vm0, %v1187_v29 }
 0x26c   : > { %5008 = vmatpush3.msra.mxu1 %v1276_v30  ;;  %5015 = vmatprep.mubr.msk.f32.mxu1 %vm5803_vm1, %v5802_v9 }
 0x26d   : > { %5009 = vmatprep.subr.mxu1 %v5802_v9  ;;  %5041 = vmatprep.mubr.msk.f32.mxu0 %vm5803_vm1, %v5802_v9 }
 0x26e   : > { %5010 = vmatpush3.msra.mxu1 %v1275_v31 }
 0x26f   : > { %5011 = vmatprep.subr.mxu1 %v5802_v9 }
 0x270   : > { %5012 = vmatpush3.msra.mxu1 %v1274_v32 }
 0x271   : > { %5013 = vmatprep.subr.mxu1 %v5802_v9 }
 0x272   : > { %5014 = vmatpush3.msra.mxu1 %v1273_v33 }
 0x273   : > { %5016 = vmatmul.mubr.msk.f32.vlgmr.msra.gmra.mxu1 %vm1149_vm0, %v1187_v29  ;;  %5029 = vmatprep.subr.mxu1 %v5802_v9 }
 0x274   : > { %5031 = vmatprep.mubr.msk.f32.mxu1 %vm5803_vm1, %v5802_v9 }
 0x32b   : > { %v1268_v34 = vpop.f32.mrf.mxu1  ;;  %v6297_v35 = vpop.f32.mrf.mxu0 }
 0x32c   : > { %v1269_v43 = vadd.f32 %v4842_v41, %v1268_v34 }
 0x32d   : > { %v5006_v36 = vpop.f32.mrf.mxu1  ;;  %v5028_v37 = vpop.f32.mrf.mxu0 }
 0x32e   : > { %v1272_v44 = vmul.f32 0.35355338, %v1269_v43 }
 0x333   : > { %v1350_v39 = vpop.f32.mrf.mxu1 }
 0x334   : > { %v1351_v40 = vadd.f32 %v4844_v38, %v1350_v39 }
 0x335   : > { %v5017_v42 = vpop.f32.mrf.mxu1 }
 0x336   : > { %1588 = vrot.lane.b32.xlu0 %v1351_v40, %s5804_s25  ;;  %1582 = vrot.lane.b32.xlu1 %v1351_v40, %s5805_s8 }
 0x33a   : > { %1585 = vrot.lane.b32.xlu1 %v1351_v40, %s5806_s2 }
 0x33e   : > { %1436 = vrot.lane.b32.xlu1 %v1272_v44, %s5805_s8 }
 0x342   : > { %1439 = vrot.lane.b32.xlu1 %v1272_v44, %s5806_s2 }
 0x346   : > { %1442 = vrot.lane.b32.xlu1 %v1272_v44, %s5804_s25 }
 0x3a8   : > { %v1589_v52 = vpop.permute.xlu0 %1588  ;;  %v1583_v53 = vpop.permute.xlu1 %1582 }
 0x3a9   : > { %v1607_v56 = vcombine.low %v1583_v53, %v1589_v52  ;;  %v1608_v57 = vcombine.high %v1583_v53, %v1589_v52 }
 0x3ab   : > { %v1615_v62 = vrot.slane %v1607_v56, %v6307_v55  ;;  %v1622_v63 = vrot.slane %v1608_v57, %v6307_v55 }
 0x3ac   : > { %v1586_v58 = vpop.permute.xlu1 %1585 }
 0x3ad   : > { %v1591_v59 = vcombine.low %v1351_v40, %v1586_v58  ;;  %v1592_v60 = vcombine.high %v1351_v40, %v1586_v58 }
 0x3af   : > { %v1599_v1 = vrot.slane %v1591_v59, %v6307_v55  ;;  %v1606_v2 = vrot.slane %v1592_v60, %v6307_v55 }
 0x3b0   : > { %v1437_v3 = vpop.permute.xlu1 %1436 }
 0x3b1   : > { %v1623_v4 = vcombine.low %v1599_v1, %v1615_v62  ;;  %v1624_v5 = vcombine.high %v1599_v1, %v1615_v62  ;;  %v1639_v6 = vcombine.low %v1606_v2, %v1622_v63  ;;  %v1640_v7 = vcombine.high %v1606_v2, %v1622_v63 }
 0x3b3   : > { %v1631_v8 = vrot.slane %v1623_v4, %v6309_v61  ;;  %v1638_v10 = vrot.slane %v1624_v5, %v6309_v61  ;;  %v1647_v11 = vrot.slane %v1639_v6, %v6309_v61  ;;  %v1654_v12 = vrot.slane %v1640_v7, %v6309_v61 }
 0x3b4   : > { %v1440_v13 = vpop.permute.xlu1 %1439 }
 0x3b5   : > { %v1659_v14 = vcombine.low %v1631_v8, %v1638_v10  ;;  %v4850_v15 = vcombine.high %v1631_v8, %v1638_v10  ;;  %v1675_v16 = vcombine.low %v1647_v11, %v1654_v12  ;;  %v4851_v17 = vcombine.high %v1647_v11, %v1654_v12  ;;  %v1143_v12 = vld [vmem:[%s1016_s0] sm:$0xff]  ;;  %s6797_s0 = sld [smem:[#allocation41_spill]] }
 0x3b6   : > { %v1445_v22 = vcombine.low %v1272_v44, %v1440_v13  ;;  %v1446_v23 = vcombine.high %v1272_v44, %v1440_v13  ;;  %vm1144_vm5 = vcmp.eq.s32.totalorder %v1143_v12, 0 }
 0x3b7   : > { %v1666_v18 = vrot.slane %v1659_v14, %v6307_v55  ;;  %v1674_v19 = vrot.slane %v4850_v15, %v6307_v55  ;;  %v1682_v20 = vrot.slane %v1675_v16, %v6307_v55  ;;  %v1690_v21 = vrot.slane %v4851_v17, %v6307_v55 }
 0x3b8   : > { %v1443_v24 = vpop.permute.xlu1 %1442  ;;  %v1453_v36 = vrot.slane %v1445_v22, %v6307_v55  ;;  %v1460_v37 = vrot.slane %v1446_v23, %v6307_v55  ;;  %v1145_v13 = vsel %vm1144_vm5, -1e+09, %v5802_v9 }
 0x3b9   : > { %v1691_v25 = vcombine.low %v1666_v18, %v1674_v19  ;;  %v1692_v26 = vcombine.high %v1666_v18, %v1674_v19  ;;  %v1707_v27 = vcombine.low %v1682_v20, %v1690_v21  ;;  %v1708_v28 = vcombine.high %v1682_v20, %v1690_v21 }
 0x3ba   : > { %v1461_v29 = vcombine.low %v1437_v3, %v1443_v24  ;;  %v1462_v30 = vcombine.high %v1437_v3, %v1443_v24 }
 0x3bb   : > { %v1699_v31 = vrot.slane %v1691_v25, %v6309_v61  ;;  %v1715_v32 = vrot.slane %v1707_v27, %v6309_v61  ;;  %v1706_v33 = vrot.slane %v1692_v26, %v6309_v61  ;;  %v1722_v34 = vrot.slane %v1708_v28, %v6309_v61 }
 0x3bc   : > { %v1469_v38 = vrot.slane %v1461_v29, %v6307_v55  ;;  %v1476_v39 = vrot.slane %v1462_v30, %v6307_v55  ;;  %v4846_v30 = vld [vmem:[%s6795_s15] ss:$0 sm:$0xff]  ;;  %s6808_s15 = sld [smem:[#allocation50_spill]] }
 0x3bd   : > { %v1723_v40 = vcombine.low %v1699_v31, %v1715_v32  ;;  %v1725_v41 = vcombine.low %v1706_v33, %v1722_v34  ;;  %v1724_v7 = vcombine.high %v1699_v31, %v1715_v32  ;;  %v1726_v10 = vcombine.high %v1706_v33, %v1722_v34 }
 0x3be   : > { %v1477_v42 = vcombine.low %v1453_v36, %v1469_v38  ;;  %v1478_v43 = vcombine.high %v1453_v36, %v1469_v38  ;;  %v1493_v44 = vcombine.low %v1460_v37, %v1476_v39  ;;  %v1494_v45 = vcombine.high %v1460_v37, %v1476_v39 }
 0x3bf   : > { %5030 = vmatpush3.xpose.msk.msra.mxu1 %vm1873_vm4, %v1723_v40  ;;  %5040 = vmatpush3.xpose.msk.msra.mxu0 %vm1873_vm4, %v1725_v41  ;;  %v1432_v31 = vadd.f32 %v4846_v30, %v6297_v35 }
 0x3c0   : > { %v1485_v46 = vrot.slane %v1477_v42, %v6309_v61  ;;  %v1492_v47 = vrot.slane %v1478_v43, %v6309_v61  ;;  %v1501_v48 = vrot.slane %v1493_v44, %v6309_v61  ;;  %v1508_v49 = vrot.slane %v1494_v45, %v6309_v61  ;;  %5034 = vmatprep.subr.mxu1 %v5802_v9 }
 0x3c1   : > { %5049 = vmatprep.subr.mxu0 %v5802_v9 }
 0x3c2   : > { %v1513_v50 = vcombine.low %v1485_v46, %v1492_v47  ;;  %v4848_v51 = vcombine.high %v1485_v46, %v1492_v47  ;;  %v1529_v52 = vcombine.low %v1501_v48, %v1508_v49  ;;  %v4849_v53 = vcombine.high %v1501_v48, %v1508_v49 }
 0x3c4   : > { %v1520_v54 = vrot.slane %v1513_v50, %v6307_v55  ;;  %v1528_v56 = vrot.slane %v4848_v51, %v6307_v55  ;;  %v1536_v57 = vrot.slane %v1529_v52, %v6307_v55  ;;  %v1544_v58 = vrot.slane %v4849_v53, %v6307_v55 }
 0x3c6   : > { %v1545_v59 = vcombine.low %v1520_v54, %v1528_v56  ;;  %v1546_v60 = vcombine.high %v1520_v54, %v1528_v56  ;;  %v1561_v62 = vcombine.low %v1536_v57, %v1544_v58  ;;  %v1562_v63 = vcombine.high %v1536_v57, %v1544_v58 }
 0x3c8   : > { %v1553_v1 = vrot.slane %v1545_v59, %v6309_v61  ;;  %v1569_v2 = vrot.slane %v1561_v62, %v6309_v61  ;;  %v1560_v3 = vrot.slane %v1546_v60, %v6309_v61  ;;  %v1576_v4 = vrot.slane %v1562_v63, %v6309_v61 }
 0x3ca   : > { %v1577_v5 = vcombine.low %v1553_v1, %v1569_v2  ;;  %v1579_v6 = vcombine.low %v1560_v3, %v1576_v4  ;;  %v1578_v8 = vcombine.high %v1553_v1, %v1569_v2  ;;  %v1580_v11 = vcombine.high %v1560_v3, %v1576_v4 }
 0x3cc   : > { %5032 = vmatmul.mubr.msk.f32.vlgmr.msra.gmra.mxu1 %vm1873_vm4, %v1577_v5  ;;  %5042 = vmatmul.mubr.msk.f32.vlgmr.msra.gmra.mxu0 %vm1873_vm4, %v1579_v6 }
 0x3cd   : > { %5035 = vmatpush3.xpose.msk.msra.mxu1 %vm1873_vm4, %v1724_v7  ;;  %5036 = vmatprep.mubr.msk.f32.mxu1 %vm5803_vm1, %v5802_v9 }
 0x3ce   : > { %5044 = vmatprep.subr.mxu1 %v5802_v9  ;;  %5051 = vmatprep.mubr.msk.f32.mxu0 %vm5803_vm1, %v5802_v9 }
 0x3d0   : > { %5037 = vmatmul.mubr.msk.f32.vlgmr.msra.gmra.mxu1 %vm1873_vm4, %v1578_v8 }
 0x3d1   : > { %5045 = vmatpush3.xpose.msk.msra.mxu1 %vm1873_vm4, %v1726_v10  ;;  %5046 = vmatprep.mubr.msk.f32.mxu1 %vm5803_vm1, %v5802_v9 }
 0x3d2   : > { %5054 = vmatprep.subr.mxu1 %v5802_v9 }
 0x3d4   : > { %5047 = vmatmul.mubr.msk.f32.vlgmr.msra.gmra.mxu1 %vm1873_vm4, %v1580_v11 }
 0x3d5   : > { %5056 = vmatprep.mubr.msk.f32.mxu1 %vm5803_vm1, %v5802_v9 }
 0x48c   : > { %v1946_v14 = vpop.f32.mrf.mxu1  ;;  %v2098_v15 = vpop.f32.mrf.mxu0 }
 0x48d   : > { %v1947_v16 = vadd.f32 %v1946_v14, %v1145_v13  ;;  %v2099_v19 = vadd.f32 %v2098_v15, %v1145_v13 }
 0x48e   : > { %v5033_v17 = vpop.f32.mrf.mxu1  ;;  %v5043_v18 = vpop.f32.mrf.mxu0 }
 0x48f   : > { %v2178_v20 = vsel %vm1873_vm4, %v1947_v16, -inf  ;;  %v2184_v24 = vsel %vm1873_vm4, %v2099_v19, -inf }
 0x490   : > { %2179 = vmax.xlane.f32.xlu1 %v2178_v20  ;;  %v2022_v21 = vpop.f32.mrf.mxu1 }
 0x491   : > { %v2023_v22 = vadd.f32 %v2022_v21, %v1145_v13 }
 0x492   : > { %v5038_v23 = vpop.f32.mrf.mxu1 }
 0x493   : > { %v2181_v25 = vsel %vm1873_vm4, %v2023_v22, -inf }
 0x494   : > { %2185 = vmax.xlane.f32.xlu1 %v2184_v24  ;;  %2182 = vmax.xlane.f32.xlu0 %v2181_v25  ;;  %v2174_v26 = vpop.f32.mrf.mxu1 }
 0x495   : > { %v2175_v27 = vadd.f32 %v2174_v26, %v1145_v13 }
 0x496   : > { %v5048_v28 = vpop.f32.mrf.mxu1 }
 0x497   : > { %v2187_v29 = vsel %vm1873_vm4, %v2175_v27, -inf }
 0x498   : > { %2188 = vmax.xlane.f32.xlu1 %v2187_v29 }
 0x4a9   : > { %1731 = vrot.lane.b32.xlu1 %v1432_v31, %s5806_s2 }
 0x519   : > { %v2180_v32 = vpop.xlane.xlu1 %2179 }
 0x51a   : > { %v2190_v33 = vsub.f32 %v1947_v16, %v2180_v32 }
 0x51c   : > { %v2194_v34 = vmul.f32 1.442695, %v2190_v33 }
 0x51d   : > { %v2186_v36 = vpop.xlane.xlu1 %2185  ;;  %v2183_v37 = vpop.xlane.xlu0 %2182 }
 0x51e   : > { %5362 = vpow2.f32 %v2194_v34  ;;  %v2192_v38 = vsub.f32 %v2099_v19, %v2186_v36  ;;  %v2191_v39 = vsub.f32 %v2023_v22, %v2183_v37 }
 0x520   : > { %v2198_v40 = vmul.f32 1.442695, %v2192_v38  ;;  %v2196_v41 = vmul.f32 1.442695, %v2191_v39 }
 0x521   : > { %v2189_v42 = vpop.xlane.xlu1 %2188 }
 0x522   : > { %5364 = vpow2.f32 %v2198_v40  ;;  %v2193_v43 = vsub.f32 %v2175_v27, %v2189_v42 }
 0x523   : > { %5366 = vpow2.f32 %v2196_v41 }
 0x524   : > { %v2200_v44 = vmul.f32 1.442695, %v2193_v43 }
 0x525   : > { %v1732_v52 = vpop.permute.xlu1 %1731 }
 0x526   : > { %5368 = vpow2.f32 %v2200_v44  ;;  %v1737_v58 = vcombine.low %v1432_v31, %v1732_v52  ;;  %v1738_v59 = vcombine.high %v1432_v31, %v1732_v52  ;;  %v2674_v44 = vld [vmem:[#allocation10 + $0x18] sm:$0xff] }
 0x528   : > { %v1745_v2 = vrot.slane %v1737_v58, %v6307_v55  ;;  %v1752_v3 = vrot.slane %v1738_v59, %v6307_v55 }
 0x52b   : > { %v5363_v45 = vpop.eup %5362 }
 0x52c   : > { %v2202_v35 = vsel %vm1873_vm4, %v5363_v45, 0.0 }
 0x52d   : > { %2203 = vadd.xlane.f32.xlu0 %v2202_v35 }
 0x52f   : > { %v6374_v46 = vpop.eup %5364 }
 0x530   : > { %v5367_v47 = vpop.eup %5366  ;;  %v2208_v48 = vsel %vm1873_vm4, %v6374_v46, 0.0 }
 0x531   : > { %2209 = vadd.xlane.f32.xlu0 %v2208_v48  ;;  %v2205_v49 = vsel %vm1873_vm4, %v5367_v47, 0.0 }
 0x532   : > { %2206 = vadd.xlane.f32.xlu1 %v2205_v49 }
 0x533   : > { %v6379_v50 = vpop.eup %5368 }
 0x534   : > { %v2211_v51 = vsel %vm1873_vm4, %v6379_v50, 0.0 }
 0x536   : > { %2212 = vadd.xlane.f32.xlu1 %v2211_v51 }
 0x547   : > { %1734 = vrot.lane.b32.xlu1 %v1432_v31, %s5804_s25  ;;  %1728 = vrot.lane.b32.xlu0 %v1432_v31, %s5805_s8 }
 0x5b6   : > { %v2204_v53 = vpop.xlane.xlu0 %2203 }
 0x5b7   : > { %5370 = vrcp.f32 %v2204_v53 }
 0x5ba   : > { %v2210_v56 = vpop.xlane.xlu0 %2209 }
 0x5bb   : > { %v2207_v54 = vpop.xlane.xlu1 %2206 }
 0x5bc   : > { %5372 = vrcp.f32 %v2207_v54 }
 0x5bd   : > { %5374 = vrcp.f32 %v2210_v56 }
 0x5be   : > { %v1729_v60 = vpop.permute.xlu0 %1728 }
 0x5bf   : > { %v2213_v57 = vpop.xlane.xlu1 %2212 }
 0x5c0   : > { %5376 = vrcp.f32 %v2213_v57 }
 0x5c3   : > { %v1735_v62 = vpop.permute.xlu1 %1734 }
 0x5c4   : > { %v1753_v63 = vcombine.low %v1729_v60, %v1735_v62  ;;  %v1754_v1 = vcombine.high %v1729_v60, %v1735_v62  ;;  %v5371_v27 = vpop.eup %5370 }
 0x5c5   : > { %v2222_v37 = vmul.f32 %v5371_v27, %v5363_v45 }
 0x5c6   : > { %v1761_v4 = vrot.slane %v1753_v63, %v6307_v55  ;;  %v1768_v5 = vrot.slane %v1754_v1, %v6307_v55 }
 0x5c8   : > { %v1769_v6 = vcombine.low %v1745_v2, %v1761_v4  ;;  %v1770_v7 = vcombine.high %v1745_v2, %v1761_v4  ;;  %v1785_v8 = vcombine.low %v1752_v3, %v1768_v5  ;;  %v1786_v10 = vcombine.high %v1752_v3, %v1768_v5  ;;  %v2673_v3 = vld [vmem:[#allocation10 + $0x10] sm:$0xff]  ;;  %v2672_v4 = vld [vmem:[#allocation10 + $0x8] sm:$0xff] }
 0x5c9   : > { %v5373_v28 = vpop.eup %5372 }
 0x5ca   : > { %v1777_v11 = vrot.slane %v1769_v6, %v6309_v61  ;;  %v1784_v12 = vrot.slane %v1770_v7, %v6309_v61  ;;  %v1793_v13 = vrot.slane %v1785_v8, %v6309_v61  ;;  %v1800_v14 = vrot.slane %v1786_v10, %v6309_v61  ;;  %v5375_v33 = vpop.eup %5374 }
 0x5cb   : > { %v2223_v38 = vmul.f32 %v5373_v28, %v5367_v47  ;;  %v2224_v42 = vmul.f32 %v5375_v33, %v6374_v46 }
 0x5cc   : > { %v1805_v15 = vcombine.low %v1777_v11, %v1784_v12  ;;  %v4852_v16 = vcombine.high %v1777_v11, %v1784_v12  ;;  %v1821_v17 = vcombine.low %v1793_v13, %v1800_v14  ;;  %v4853_v18 = vcombine.high %v1793_v13, %v1800_v14  ;;  %v2671_v14 = vld [vmem:[#allocation10] sm:$0xff] }
 0x5cd   : > { %v5377_v39 = vpop.eup %5376 }
 0x5ce   : > { %v1812_v19 = vrot.slane %v1805_v15, %v6307_v55  ;;  %v1820_v20 = vrot.slane %v4852_v16, %v6307_v55  ;;  %v1828_v21 = vrot.slane %v1821_v17, %v6307_v55  ;;  %v1836_v22 = vrot.slane %v4853_v18, %v6307_v55 }
 0x5cf   : > { %v2225_v43 = vmul.f32 %v5377_v39, %v6379_v50 }
 0x5d0   : > { %v1837_v23 = vcombine.low %v1812_v19, %v1820_v20  ;;  %v1853_v24 = vcombine.low %v1828_v21, %v1836_v22  ;;  %v1838_v25 = vcombine.high %v1812_v19, %v1820_v20  ;;  %v1854_v26 = vcombine.high %v1828_v21, %v1836_v22 }
 0x5d2   : > { %v1845_v29 = vrot.slane %v1837_v23, %v6309_v61  ;;  %v1861_v30 = vrot.slane %v1853_v24, %v6309_v61  ;;  %v1852_v31 = vrot.slane %v1838_v25, %v6309_v61  ;;  %v1868_v32 = vrot.slane %v1854_v26, %v6309_v61 }
 0x5d4   : > { %v1869_v34 = vcombine.low %v1845_v29, %v1861_v30  ;;  %v1870_v36 = vcombine.high %v1845_v29, %v1861_v30  ;;  %v1871_v40 = vcombine.low %v1852_v31, %v1868_v32  ;;  %v1872_v41 = vcombine.high %v1852_v31, %v1868_v32 }
 0x5d6   : > { %5050 = vmatpush3.msra.mxu0 %v1869_v34  ;;  %5055 = vmatpush3.msra.mxu1 %v1870_v36 }
 0x5d7   : > { %5052 = vmatmul.mubr.msk.f32.vlgmr.msra.gmra.mxu0 %vm1873_vm4, %v2222_v37  ;;  %5057 = vmatmul.mubr.msk.f32.vlgmr.msra.gmra.mxu1 %vm1873_vm4, %v2223_v38  ;;  %v4868_v38 = vld [vmem:[%s6796_s6] ss:$0 sm:$0xff]  ;;  %s6810_s6 = sld [smem:[#allocation54_spill]] }
 0x5d8   : > { %5059 = vmatprep.subr.mxu0 %v5802_v9  ;;  %5064 = vmatprep.subr.mxu1 %v5802_v9 }
 0x5d9   : > { %5060 = vmatpush3.msra.mxu0 %v1871_v40  ;;  %5065 = vmatpush3.msra.mxu1 %v1872_v41 }
 0x5da   : > { %5061 = vmatprep.mubr.msk.f32.mxu0 %vm5803_vm1, %v5802_v9  ;;  %5066 = vmatprep.mubr.msk.f32.mxu1 %vm5803_vm1, %v5802_v9 }
 0x5db   : > { %5062 = vmatmul.mubr.msk.f32.vlgmr.msra.gmra.mxu0 %vm1873_vm4, %v2224_v42  ;;  %5067 = vmatmul.mubr.msk.f32.vlgmr.msra.gmra.mxu1 %vm1873_vm4, %v2225_v43 }
 0x5dc   : > { %5069 = vmatprep.subr.mxu0 %v5802_v9  ;;  %5077 = vmatprep.mubr.msk.f32.mxu0 %vm5803_vm1, %v5802_v9 }
 0x5dd   : > { %5080 = vmatprep.subr.mxu1 %v5802_v9  ;;  %5088 = vmatprep.mubr.msk.f32.mxu1 %vm5803_vm1, %v5802_v9  ;;  %p6811_p1 = scmp.ne.s32.totalorder %s6810_s6, 0 }
 0x5de   : > { %5070 = vmatpush3.msra.mxu0 %v2674_v44  ;;  %v2881_v44 = vld [vmem:[#allocation13 + $0x18] sm:$0xff] }
 0x5df   : > { %5071 = vmatprep.subr.mxu0 %v5802_v9 }
 0x5e0   : > { %5072 = vmatpush3.msra.mxu0 %v2673_v3 }
 0x5e1   : > { %5073 = vmatprep.subr.mxu0 %v5802_v9 }
 0x5e2   : > { %5074 = vmatpush3.msra.mxu0 %v2672_v4 }
 0x5e3   : > { %5075 = vmatprep.subr.mxu0 %v5802_v9 }
 0x5e4   : > { %5076 = vmatpush3.msra.mxu0 %v2671_v14 }
 0x5e5   : > { %5091 = vmatprep.subr.mxu0 %v5802_v9 }
 0x697   : > { %v2295_v45 = vpop.f32.mrf.mxu0  ;;  %v2368_v35 = vpop.f32.mrf.mxu1 }
 0x699   : > { %v5053_v46 = vpop.f32.mrf.mxu0  ;;  %v5058_v47 = vpop.f32.mrf.mxu1 }
 0x69a   : > { %v2878_v46 = vld [vmem:[#allocation13] sm:$0xff]  ;;  %v6458_v47 = vld [vmem:[%s1007_s9] sm:$0xff]  ;;  %s6798_s9 = sld [smem:[#allocation37_spill]] }
 0x69b   : > { %v2441_v48 = vpop.f32.mrf.mxu0  ;;  %v2514_v49 = vpop.f32.mrf.mxu1 }
 0x69c   : > { %v2518_v50 = vcombine.low %v2295_v45, %v2441_v48  ;;  %v2519_v51 = vcombine.high %v2295_v45, %v2441_v48  ;;  %v2534_v52 = vcombine.low %v2368_v35, %v2514_v49  ;;  %v2535_v53 = vcombine.high %v2368_v35, %v2514_v49  ;;  %v2880_v45 = vld [vmem:[#allocation13 + $0x10] sm:$0xff]  ;;  %v2879_v35 = vld [vmem:[#allocation13 + $0x8] sm:$0xff] }
 0x69d   : > { %v5063_v54 = vpop.f32.mrf.mxu0  ;;  %v5068_v56 = vpop.f32.mrf.mxu1 }
 0x69e   : > { %v2526_v57 = vrot.slane %v2518_v50, %v6307_v55  ;;  %v2533_v58 = vrot.slane %v2519_v51, %v6307_v55  ;;  %v2542_v59 = vrot.slane %v2534_v52, %v6307_v55  ;;  %v2549_v60 = vrot.slane %v2535_v53, %v6307_v55  ;;  %v2796_v52 = vld [vmem:[#allocation11 + $0x18] sm:$0xff]  ;;  %v2795_v53 = vld [vmem:[#allocation11 + $0x10] sm:$0xff]  ;;  %v2794_v54 = vld [vmem:[#allocation11 + $0x8] sm:$0xff] }
 0x69f   : > { %5081 = vmatpush3.msra.mxu1 %v2796_v52  ;;  %v2793_v56 = vld [vmem:[#allocation11] sm:$0xff] }
 0x6a0   : > { %v2550_v62 = vcombine.low %v2526_v57, %v2542_v59  ;;  %v2551_v63 = vcombine.high %v2526_v57, %v2542_v59  ;;  %v2566_v1 = vcombine.low %v2533_v58, %v2549_v60  ;;  %v2567_v2 = vcombine.high %v2533_v58, %v2549_v60  ;;  %5082 = vmatprep.subr.mxu1 %v5802_v9  ;;  %v4874_v57 = vld [vmem:[%s6797_s0] ss:$0 sm:$0xff] }
 0x6a1   : > { %5083 = vmatpush3.msra.mxu1 %v2795_v53  ;;  %v2962_v52 = vld [vmem:[#allocation14] sm:$0xff] }
 0x6a2   : > { %v2558_v5 = vrot.slane %v2550_v62, %v6309_v61  ;;  %v2565_v6 = vrot.slane %v2551_v63, %v6309_v61  ;;  %v2574_v7 = vrot.slane %v2566_v1, %v6309_v61  ;;  %v2581_v8 = vrot.slane %v2567_v2, %v6309_v61  ;;  %5084 = vmatprep.subr.mxu1 %v5802_v9 }
 0x6a3   : > { %5085 = vmatpush3.msra.mxu1 %v2794_v54 }
 0x6a4   : > { %v2586_v10 = vcombine.low %v2558_v5, %v2565_v6  ;;  %v4866_v11 = vcombine.high %v2558_v5, %v2565_v6  ;;  %v2602_v12 = vcombine.low %v2574_v7, %v2581_v8  ;;  %v4867_v13 = vcombine.high %v2574_v7, %v2581_v8  ;;  %5086 = vmatprep.subr.mxu1 %v5802_v9  ;;  %v4870_v8 = vld [vmem:[%s6798_s9] ss:$0 sm:$0xff] }
 0x6a5   : > { %5087 = vmatpush3.msra.mxu1 %v2793_v56 }
 0x6a6   : > { %v2593_v15 = vrot.slane %v2586_v10, %v6307_v55  ;;  %v2601_v16 = vrot.slane %v4866_v11, %v6307_v55  ;;  %v2609_v17 = vrot.slane %v2602_v12, %v6307_v55  ;;  %v2617_v18 = vrot.slane %v4867_v13, %v6307_v55  ;;  %5102 = vmatprep.subr.mxu1 %v5802_v9  ;;  %v4871_v11 = vld [vmem:[%s6799_s4] ss:$0 sm:$0xff]  ;;  %s4575_s4 = scalar_lea.sflag [#allocation4], %s6211_s1 }
 0x6a8   : > { %v2619_v19 = vcombine.high %v2593_v15, %v2601_v16  ;;  %v2635_v20 = vcombine.high %v2609_v17, %v2617_v18  ;;  %v2618_v21 = vcombine.low %v2593_v15, %v2601_v16  ;;  %v2634_v22 = vcombine.low %v2609_v17, %v2617_v18 }
 0x6aa   : > { %v2633_v23 = vrot.slane %v2619_v19, %v6309_v61  ;;  %v2649_v24 = vrot.slane %v2635_v20, %v6309_v61  ;;  %v2626_v25 = vrot.slane %v2618_v21, %v6309_v61  ;;  %v2642_v26 = vrot.slane %v2634_v22, %v6309_v61 }
 0x6ac   : > { %v2652_v27 = vcombine.low %v2633_v23, %v2649_v24  ;;  %v2651_v28 = vcombine.high %v2626_v25, %v2642_v26  ;;  %v2650_v29 = vcombine.low %v2626_v25, %v2642_v26  ;;  %v2653_v30 = vcombine.high %v2633_v23, %v2649_v24 }
 0x6ae   : > { %2659 = vrot.lane.b32.xlu1 %v2652_v27, %s5809_s23  ;;  %2655 = vrot.lane.b32.xlu0 %v2651_v28, %s5810_s30 }
 0x6b2   : > { %2663 = vrot.lane.b32.xlu0 %v2653_v30, %s5811_s28 }
 0x720   : > { %v2656_v31 = vpop.permute.xlu0 %2655  ;;  %v2660_v32 = vpop.permute.xlu1 %2659 }
 0x721   : > { %v2666_v33 = vsel %vm1873_vm4, %v2650_v29, %v2656_v31 }
 0x722   : > { %v2668_v36 = vsel %vm2667_vm6, %v2666_v33, %v2660_v32 }
 0x724   : > { %v2664_v34 = vpop.permute.xlu0 %2663 }
 0x725   : > { %v2670_v37 = vsel %vm2669_vm7, %v2668_v36, %v2664_v34 }
 0x726   : > { %5078 = vmatmul.mubr.msk.f32.vlgmr.msra.gmra.mxu0 %vm1149_vm0, %v2670_v37 }
 0x727   : > { %5099 = vmatprep.mubr.msk.f32.mxu0 %vm5803_vm1, %v5802_v9  ;;  %5092 = vmatpush3.msra.mxu0 %v2881_v44 }
 0x728   : > { %5093 = vmatprep.subr.mxu0 %v5802_v9 }
 0x729   : > { %5094 = vmatpush3.msra.mxu0 %v2880_v45 }
 0x72a   : > { %5095 = vmatprep.subr.mxu0 %v5802_v9 }
 0x72b   : > { %5096 = vmatpush3.msra.mxu0 %v2879_v35 }
 0x72c   : > { %5097 = vmatprep.subr.mxu0 %v5802_v9 }
 0x72d   : > { %5098 = vmatpush3.msra.mxu0 %v2878_v46  ;;  %v2965_v46 = vld [vmem:[#allocation14 + $0x18] sm:$0xff] }
 0x72e   : > { %5100 = vmatmul.mubr.msk.f32.vlgmr.msra.gmra.mxu0 %vm1149_vm0, %v6458_v47  ;;  %5113 = vmatprep.subr.mxu0 %v5802_v9 }
 0x72f   : > { %5115 = vmatprep.mubr.msk.f32.mxu0 %vm5803_vm1, %v5802_v9 }
 0x7e6   : > { %v2751_v39 = vpop.f32.mrf.mxu0 }
 0x7e7   : > { %v2752_v40 = vadd.f32 %v4868_v38, %v2751_v39 }
 0x7e8   : > { %v5079_v41 = vpop.f32.mrf.mxu0 }
 0x7e9   : > { %v6450_v42 = vadd.f32 %v2752_v40, %v6250_v0 }
 0x7eb   : > { %v2756_v43 = vsel %vm1149_vm0, %v6450_v42, 0.0 }
 0x7ec   : > { %2757 = vadd.xlane.f32.xlu1 %v2756_v43 }
 0x7ee   : > { %v2958_v58 = vpop.f32.mrf.mxu0 }
 0x7ef   : > { %v2959_v59 = vadd.f32 %v4874_v57, %v2958_v58 }
 0x7f0   : > { %v5101_v60 = vpop.f32.mrf.mxu0 }
 0x7fd   : > { %3193 = vrot.lane.b32.xlu1 %v2959_v59, %s5806_s2 }
 0x801   : > { %3196 = vrot.lane.b32.xlu1 %v2959_v59, %s5804_s25 }
 0x875   : > { %v2758_v0 = vpop.xlane.xlu1 %2757 }
 0x876   : > { %v2759_v48 = vmul.f32 0.03125, %v2758_v0  ;;  %v2964_v0 = vld [vmem:[#allocation14 + $0x10] sm:$0xff] }
 0x878   : > { %v2760_v49 = vsub.f32 %v6450_v42, %v2759_v48 }
 0x879   : > { %v3194_v14 = vpop.permute.xlu1 %3193 }
 0x87a   : > { %v2761_v50 = vmul.f32 %v2760_v49, %v2760_v49  ;;  %v3199_v15 = vcombine.low %v2959_v59, %v3194_v14  ;;  %v3200_v16 = vcombine.high %v2959_v59, %v3194_v14 }
 0x87c   : > { %v2762_v51 = vsel %vm1149_vm0, %v2761_v50, 0.0  ;;  %v3207_v19 = vrot.slane %v3199_v15, %v6307_v55  ;;  %v3214_v20 = vrot.slane %v3200_v16, %v6307_v55  ;;  %v2963_v50 = vld [vmem:[#allocation14 + $0x8] sm:$0xff] }
 0x87d   : > { %2763 = vadd.xlane.f32.xlu0 %v2762_v51  ;;  %v3197_v18 = vpop.permute.xlu1 %3196 }
 0x893   : > { %3190 = vrot.lane.b32.xlu0 %v2959_v59, %s5805_s8  ;;  %v4872_v59 = vld [vmem:[%s6800_s11] ss:$0 sm:$0xff] }
 0x906   : > { %v2764_v62 = vpop.xlane.xlu0 %2763 }
 0x907   : > { %v2765_v63 = vmul.f32 0.032258064, %v2764_v62 }
 0x909   : > { %5378 = vrsqrt.f32 %v2765_v63  ;;  %vm2768_vm8 = vcmp.eq.f32.partialorder %v2765_v63, inf  ;;  %v2771_v3 = vand.u32 2147483648, %v2765_v63  ;;  %vm2770_vm9 = vcmp.eq.f32.partialorder %v2765_v63, 0.0 }
 0x90a   : > { %v3191_v17 = vpop.permute.xlu0 %3190 }
 0x90b   : > { %v3215_v21 = vcombine.low %v3191_v17, %v3197_v18  ;;  %v3216_v22 = vcombine.high %v3191_v17, %v3197_v18 }
 0x90d   : > { %v3223_v23 = vrot.slane %v3215_v21, %v6307_v55  ;;  %v3230_v24 = vrot.slane %v3216_v22, %v6307_v55 }
 0x90f   : > { %v3231_v25 = vcombine.low %v3207_v19, %v3223_v23  ;;  %v3232_v26 = vcombine.high %v3207_v19, %v3223_v23  ;;  %v3247_v27 = vcombine.low %v3214_v20, %v3230_v24  ;;  %v3248_v28 = vcombine.high %v3214_v20, %v3230_v24 }
 0x911   : > { %v3239_v29 = vrot.slane %v3231_v25, %v6309_v61  ;;  %v3246_v30 = vrot.slane %v3232_v26, %v6309_v61  ;;  %v3255_v31 = vrot.slane %v3247_v27, %v6309_v61  ;;  %v3262_v32 = vrot.slane %v3248_v28, %v6309_v61 }
 0x913   : > { %v3267_v33 = vcombine.low %v3239_v29, %v3246_v30  ;;  %v4880_v34 = vcombine.high %v3239_v29, %v3246_v30  ;;  %v3283_v36 = vcombine.low %v3255_v31, %v3262_v32  ;;  %v4881_v37 = vcombine.high %v3255_v31, %v3262_v32 }
 0x915   : > { %v3274_v38 = vrot.slane %v3267_v33, %v6307_v55  ;;  %v3282_v39 = vrot.slane %v4880_v34, %v6307_v55  ;;  %v3290_v40 = vrot.slane %v3283_v36, %v6307_v55  ;;  %v3298_v41 = vrot.slane %v4881_v37, %v6307_v55 }
 0x916   : > { %v5379_v1 = vpop.eup %5378 }
 0x917   : > { %v2767_v2 = vmul.f32 %v5379_v1, %v2765_v63  ;;  %v3300_v43 = vcombine.high %v3274_v38, %v3282_v39  ;;  %v3316_v44 = vcombine.high %v3290_v40, %v3298_v41  ;;  %v3299_v45 = vcombine.low %v3274_v38, %v3282_v39 }
 0x918   : > { %v3315_v35 = vcombine.low %v3290_v40, %v3298_v41 }
 0x919   : > { %v2769_v4 = vsel %vm2768_vm8, %v2765_v63, %v2767_v2  ;;  %v3307_v48 = vrot.slane %v3299_v45, %v6309_v61  ;;  %v3314_v54 = vrot.slane %v3300_v43, %v6309_v61  ;;  %v3330_v56 = vrot.slane %v3316_v44, %v6309_v61  ;;  %v1146_v45 = vld [vmem:[%s1025_s3] sm:$0xff]  ;;  %s6801_s3 = sld [smem:[#allocation43_spill]] }
 0x91a   : > { %v2772_v5 = vsel %vm2770_vm9, %v2771_v3, %v2769_v4  ;;  %vm1147_vm10 = vcmp.eq.s32.totalorder %v1146_v45, 0 }
 0x91b   : > { %v2773_v6 = vadd.f32 1e-06, %v2772_v5  ;;  %v3333_v57 = vcombine.low %v3314_v54, %v3330_v56  ;;  %v3334_v58 = vcombine.high %v3314_v54, %v3330_v56 }
 0x91d   : > { %5380 = vrcp.f32 %v2773_v6 }
 0x92a   : > { %v5381_v7 = vpop.eup %5380 }
 0x92b   : > { %v2777_v10 = vmul.f32 %v5381_v7, %v2760_v49  ;;  %v3323_v49 = vrot.slane %v3315_v35, %v6309_v61  ;;  %v1148_v35 = vsel %vm1147_vm10, -1e+09, %v5802_v9 }
 0x92d   : > { %v2784_v12 = vmul.f32 %v4870_v8, %v2777_v10  ;;  %v3331_v51 = vcombine.low %v3307_v48, %v3323_v49  ;;  %v3332_v53 = vcombine.high %v3307_v48, %v3323_v49 }
 0x92f   : > { %v2792_v13 = vadd.f32 %v4871_v11, %v2784_v12  ;;  %5114 = vmatpush3.xpose.msk.msra.mxu0 %vm1873_vm4, %v3331_v51 }
 0x930   : > { %5123 = vmatprep.subr.mxu0 %v5802_v9 }
 0x931   : > { %5089 = vmatmul.mubr.msk.f32.vlgmr.msra.gmra.mxu1 %vm1149_vm0, %v2792_v13 }
 0x932   : > { %5110 = vmatprep.mubr.msk.f32.mxu1 %vm5803_vm1, %v5802_v9  ;;  %5103 = vmatpush3.msra.mxu1 %v2965_v46 }
 0x933   : > { %5104 = vmatprep.subr.mxu1 %v5802_v9 }
 0x934   : > { %5105 = vmatpush3.msra.mxu1 %v2964_v0 }
 0x935   : > { %5106 = vmatprep.subr.mxu1 %v5802_v9 }
 0x936   : > { %5107 = vmatpush3.msra.mxu1 %v2963_v50 }
 0x937   : > { %5108 = vmatprep.subr.mxu1 %v5802_v9 }
 0x938   : > { %5109 = vmatpush3.msra.mxu1 %v2962_v52 }
 0x939   : > { %5118 = vmatprep.subr.mxu1 %v5802_v9  ;;  %5111 = vmatmul.mubr.msk.f32.vlgmr.msra.gmra.mxu1 %vm1149_vm0, %v6458_v47 }
 0x93a   : > { %5119 = vmatpush3.xpose.msk.msra.mxu1 %vm1873_vm4, %v3332_v53  ;;  %5120 = vmatprep.mubr.msk.f32.mxu1 %vm5803_vm1, %v5802_v9 }
 0x93b   : > { %5128 = vmatprep.subr.mxu1 %v5802_v9 }
 0x9f1   : > { %v2873_v60 = vpop.f32.mrf.mxu1 }
 0x9f2   : > { %v2874_v62 = vadd.f32 %v4872_v59, %v2873_v60 }
 0x9f3   : > { %v5090_v63 = vpop.f32.mrf.mxu1 }
 0x9f4   : > { %v2877_v1 = vmul.f32 0.35355338, %v2874_v62 }
 0x9f6   : > { %3047 = vrot.lane.b32.xlu1 %v2877_v1, %s5806_s2  ;;  %3044 = vrot.lane.b32.xlu0 %v2877_v1, %s5805_s8 }
 0x9f9   : > { %v6513_v47 = vpop.f32.mrf.mxu1 }
 0x9fa   : > { %3050 = vrot.lane.b32.xlu0 %v2877_v1, %s5804_s25 }
 0x9fb   : > { %v5112_v2 = vpop.f32.mrf.mxu1 }
 0xa68   : > { %v3048_v3 = vpop.permute.xlu1 %3047  ;;  %v3045_v4 = vpop.permute.xlu0 %3044 }
 0xa69   : > { %v3053_v5 = vcombine.low %v2877_v1, %v3048_v3  ;;  %v3054_v6 = vcombine.high %v2877_v1, %v3048_v3 }
 0xa6b   : > { %v3061_v11 = vrot.slane %v3053_v5, %v6307_v55  ;;  %v3068_v12 = vrot.slane %v3054_v6, %v6307_v55 }
 0xa6c   : > { %v3051_v7 = vpop.permute.xlu0 %3050 }
 0xa6d   : > { %v3069_v8 = vcombine.low %v3045_v4, %v3051_v7  ;;  %v3070_v10 = vcombine.high %v3045_v4, %v3051_v7 }
 0xa6f   : > { %v3077_v13 = vrot.slane %v3069_v8, %v6307_v55  ;;  %v3084_v14 = vrot.slane %v3070_v10, %v6307_v55 }
 0xa71   : > { %v3085_v15 = vcombine.low %v3061_v11, %v3077_v13  ;;  %v3086_v16 = vcombine.high %v3061_v11, %v3077_v13  ;;  %v3101_v17 = vcombine.low %v3068_v12, %v3084_v14  ;;  %v3102_v18 = vcombine.high %v3068_v12, %v3084_v14 }
 0xa73   : > { %v3093_v19 = vrot.slane %v3085_v15, %v6309_v61  ;;  %v3100_v20 = vrot.slane %v3086_v16, %v6309_v61  ;;  %v3109_v21 = vrot.slane %v3101_v17, %v6309_v61  ;;  %v3116_v22 = vrot.slane %v3102_v18, %v6309_v61  ;;  %v4876_v17 = vld [vmem:[%s6801_s3] ss:$0 sm:$0xff]  ;;  %s5812_s3 = smov [#allocation19]  }
 0xa74   : > { %v3040_v18 = vadd.f32 %v4876_v17, %v6513_v47 }
 0xa75   : > { %v3121_v23 = vcombine.low %v3093_v19, %v3100_v20  ;;  %v4878_v24 = vcombine.high %v3093_v19, %v3100_v20  ;;  %v3137_v25 = vcombine.low %v3109_v21, %v3116_v22  ;;  %v4879_v26 = vcombine.high %v3109_v21, %v3116_v22 }
 0xa77   : > { %v3128_v27 = vrot.slane %v3121_v23, %v6307_v55  ;;  %v3136_v28 = vrot.slane %v4878_v24, %v6307_v55  ;;  %v3144_v29 = vrot.slane %v3137_v25, %v6307_v55  ;;  %v3152_v30 = vrot.slane %v4879_v26, %v6307_v55 }
 0xa79   : > { %v3153_v31 = vcombine.low %v3128_v27, %v3136_v28  ;;  %v3154_v32 = vcombine.high %v3128_v27, %v3136_v28  ;;  %v3169_v33 = vcombine.low %v3144_v29, %v3152_v30  ;;  %v3170_v34 = vcombine.high %v3144_v29, %v3152_v30 }
 0xa7b   : > { %v3161_v36 = vrot.slane %v3153_v31, %v6309_v61  ;;  %v3177_v37 = vrot.slane %v3169_v33, %v6309_v61  ;;  %v3168_v40 = vrot.slane %v3154_v32, %v6309_v61  ;;  %v3184_v41 = vrot.slane %v3170_v34, %v6309_v61 }
 0xa7d   : > { %v3185_v38 = vcombine.low %v3161_v36, %v3177_v37  ;;  %v3186_v39 = vcombine.high %v3161_v36, %v3177_v37  ;;  %v3187_v43 = vcombine.low %v3168_v40, %v3184_v41  ;;  %v3188_v44 = vcombine.high %v3168_v40, %v3184_v41 }
 0xa7f   : > { %5116 = vmatmul.mubr.msk.f32.vlgmr.msra.gmra.mxu0 %vm1873_vm4, %v3185_v38  ;;  %5121 = vmatmul.mubr.msk.f32.vlgmr.msra.gmra.mxu1 %vm1873_vm4, %v3186_v39 }
 0xa80   : > { %5124 = vmatpush3.xpose.msk.msra.mxu0 %vm1873_vm4, %v3333_v57  ;;  %5129 = vmatpush3.xpose.msk.msra.mxu1 %vm1873_vm4, %v3334_v58 }
 0xa81   : > { %5125 = vmatprep.mubr.msk.f32.mxu0 %vm5803_vm1, %v5802_v9  ;;  %5130 = vmatprep.mubr.msk.f32.mxu1 %vm5803_vm1, %v5802_v9 }
 0xa82   : > { %5133 = vmatprep.subr.mxu0 %v5802_v9  ;;  %5138 = vmatprep.subr.mxu1 %v5802_v9 }
 0xa83   : > { %5126 = vmatmul.mubr.msk.f32.vlgmr.msra.gmra.mxu0 %vm1873_vm4, %v3187_v43  ;;  %5131 = vmatmul.mubr.msk.f32.vlgmr.msra.gmra.mxu1 %vm1873_vm4, %v3188_v44 }
 0xa84   : > { %5135 = vmatprep.mubr.msk.f32.mxu0 %vm5803_vm1, %v5802_v9  ;;  %5140 = vmatprep.mubr.msk.f32.mxu1 %vm5803_vm1, %v5802_v9 }
 0xb3f   : > { %v3553_v46 = vpop.f32.mrf.mxu0  ;;  %v3629_v0 = vpop.f32.mrf.mxu1 }
 0xb40   : > { %v3554_v48 = vadd.f32 %v3553_v46, %v1148_v35  ;;  %v3630_v49 = vadd.f32 %v3629_v0, %v1148_v35 }
 0xb41   : > { %v5117_v50 = vpop.f32.mrf.mxu0  ;;  %v5122_v51 = vpop.f32.mrf.mxu1 }
 0xb42   : > { %v3785_v52 = vsel %vm1873_vm4, %v3554_v48, -inf  ;;  %v3788_v53 = vsel %vm1873_vm4, %v3630_v49, -inf }
 0xb43   : > { %3786 = vmax.xlane.f32.xlu1 %v3785_v52  ;;  %v3705_v54 = vpop.f32.mrf.mxu0  ;;  %3789 = vmax.xlane.f32.xlu0 %v3788_v53  ;;  %v3781_v56 = vpop.f32.mrf.mxu1 }
 0xb44   : > { %v3706_v57 = vadd.f32 %v3705_v54, %v1148_v35  ;;  %v3782_v58 = vadd.f32 %v3781_v56, %v1148_v35 }
 0xb45   : > { %v5127_v59 = vpop.f32.mrf.mxu0  ;;  %v5132_v60 = vpop.f32.mrf.mxu1 }
 0xb46   : > { %v3791_v62 = vsel %vm1873_vm4, %v3706_v57, -inf  ;;  %v3794_v63 = vsel %vm1873_vm4, %v3782_v58, -inf }
 0xb47   : > { %3792 = vmax.xlane.f32.xlu0 %v3791_v62  ;;  %3795 = vmax.xlane.f32.xlu1 %v3794_v63 }
 0xbcc   : > { %v3787_v1 = vpop.xlane.xlu1 %3786  ;;  %v3790_v2 = vpop.xlane.xlu0 %3789 }
 0xbcd   : > { %v3797_v3 = vsub.f32 %v3554_v48, %v3787_v1  ;;  %v3798_v4 = vsub.f32 %v3630_v49, %v3790_v2 }
 0xbcf   : > { %v3801_v5 = vmul.f32 1.442695, %v3797_v3  ;;  %v3803_v6 = vmul.f32 1.442695, %v3798_v4 }
 0xbd0   : > { %v3793_v7 = vpop.xlane.xlu0 %3792  ;;  %v3796_v19 = vpop.xlane.xlu1 %3795 }
 0xbd1   : > { %5382 = vpow2.f32 %v3801_v5  ;;  %v3799_v8 = vsub.f32 %v3706_v57, %v3793_v7  ;;  %v3800_v20 = vsub.f32 %v3782_v58, %v3796_v19 }
 0xbd2   : > { %5384 = vpow2.f32 %v3803_v6 }
 0xbd3   : > { %v3805_v10 = vmul.f32 1.442695, %v3799_v8  ;;  %v3807_v21 = vmul.f32 1.442695, %v3800_v20 }
 0xbd5   : > { %5386 = vpow2.f32 %v3805_v10 }
 0xbd6   : > { %5388 = vpow2.f32 %v3807_v21 }
 0xbde   : > { %v6554_v11 = vpop.eup %5382 }
 0xbdf   : > { %v6556_v12 = vpop.eup %5384  ;;  %v3809_v13 = vsel %vm1873_vm4, %v6554_v11, 0.0 }
 0xbe0   : > { %3810 = vadd.xlane.f32.xlu0 %v3809_v13  ;;  %v3812_v14 = vsel %vm1873_vm4, %v6556_v12, 0.0 }
 0xbe1   : > { %3813 = vadd.xlane.f32.xlu1 %v3812_v14 }
 0xbe2   : > { %v6562_v15 = vpop.eup %5386 }
 0xbe3   : > { %v3815_v16 = vsel %vm1873_vm4, %v6562_v15, 0.0  ;;  %v6570_v22 = vpop.eup %5388 }
 0xbe4   : > { %3816 = vadd.xlane.f32.xlu0 %v3815_v16  ;;  %v3818_v23 = vsel %vm1873_vm4, %v6570_v22, 0.0 }
 0xbf2   : > { %3339 = vrot.lane.b32.xlu1 %v3040_v18, %s5806_s2  ;;  %s6807_s2 = sld [smem:[#allocation49_spill]] }
 0xbfa   : > { %3336 = vrot.lane.b32.xlu0 %v3040_v18, %s5805_s8  ;;  %s6806_s8 = sld [smem:[#allocation47_spill]] }
 0xc16   : > { %3819 = vadd.xlane.f32.xlu1 %v3818_v23 }
 0xc27   : > { %3342 = vrot.lane.b32.xlu1 %v3040_v18, %s5804_s25  ;;  %s6805_s25 = sld [smem:[#allocation46_spill]] }
 0xc69   : > { %v3811_v25 = vpop.xlane.xlu0 %3810 }
 0xc6a   : > { %v3814_v24 = vpop.xlane.xlu1 %3813  ;;  %5390 = vrcp.f32 %v3811_v25 }
 0xc6b   : > { %5392 = vrcp.f32 %v3814_v24 }
 0xc6d   : > { %v3817_v47 = vpop.xlane.xlu0 %3816 }
 0xc6e   : > { %v3340_v26 = vpop.permute.xlu1 %3339  ;;  %5394 = vrcp.f32 %v3817_v47 }
 0xc6f   : > { %v3345_v28 = vcombine.low %v3040_v18, %v3340_v26  ;;  %v3346_v29 = vcombine.high %v3040_v18, %v3340_v26 }
 0xc71   : > { %v3337_v30 = vpop.permute.xlu0 %3336  ;;  %v3353_v34 = vrot.slane %v3345_v28, %v6307_v55  ;;  %v3360_v36 = vrot.slane %v3346_v29, %v6307_v55 }
 0xc77   : > { %v5391_v60 = vpop.eup %5390 }
 0xc78   : > { %v5393_v62 = vpop.eup %5392  ;;  %v3829_v7 = vmul.f32 %v5391_v60, %v6554_v11 }
 0xc79   : > { %v3830_v8 = vmul.f32 %v5393_v62, %v6556_v12  ;;  %v4279_v12 = vld [vmem:[#allocation16 + $0x18] sm:$0xff] }
 0xc7b   : > { %v5395_v4 = vpop.eup %5394 }
 0xc7c   : > { %v3831_v16 = vmul.f32 %v5395_v4, %v6562_v15 }
 0xc9f   : > { %v3820_v27 = vpop.xlane.xlu1 %3819 }
 0xca0   : > { %5396 = vrcp.f32 %v3820_v27 }
 0xca3   : > { %v3343_v31 = vpop.permute.xlu1 %3342 }
 0xca4   : > { %v3361_v32 = vcombine.low %v3337_v30, %v3343_v31  ;;  %v3362_v33 = vcombine.high %v3337_v30, %v3343_v31 }
 0xca6   : > { %v3369_v37 = vrot.slane %v3361_v32, %v6307_v55  ;;  %v3376_v38 = vrot.slane %v3362_v33, %v6307_v55 }
 0xca8   : > { %v3377_v39 = vcombine.low %v3353_v34, %v3369_v37  ;;  %v3378_v40 = vcombine.high %v3353_v34, %v3369_v37  ;;  %v3393_v41 = vcombine.low %v3360_v36, %v3376_v38  ;;  %v3394_v43 = vcombine.high %v3360_v36, %v3376_v38  ;;  %v4278_v36 = vld [vmem:[#allocation16 + $0x10] sm:$0xff]  ;;  %v4277_v37 = vld [vmem:[#allocation16 + $0x8] sm:$0xff] }
 0xcaa   : > { %v3385_v44 = vrot.slane %v3377_v39, %v6309_v61  ;;  %v3392_v45 = vrot.slane %v3378_v40, %v6309_v61  ;;  %v3401_v35 = vrot.slane %v3393_v41, %v6309_v61  ;;  %v3408_v46 = vrot.slane %v3394_v43, %v6309_v61 }
 0xcac   : > { %v3413_v0 = vcombine.low %v3385_v44, %v3392_v45  ;;  %v4882_v48 = vcombine.high %v3385_v44, %v3392_v45  ;;  %v3429_v49 = vcombine.low %v3401_v35, %v3408_v46  ;;  %v4883_v50 = vcombine.high %v3401_v35, %v3408_v46  ;;  %v4276_v46 = vld [vmem:[#allocation16] sm:$0xff] }
 0xcad   : > { %v5397_v10 = vpop.eup %5396 }
 0xcae   : > { %v3420_v51 = vrot.slane %v3413_v0, %v6307_v55  ;;  %v3428_v52 = vrot.slane %v4882_v48, %v6307_v55  ;;  %v3436_v53 = vrot.slane %v3429_v49, %v6307_v55  ;;  %v3444_v54 = vrot.slane %v4883_v50, %v6307_v55 }
 0xcaf   : > { %v3832_v11 = vmul.f32 %v5397_v10, %v6570_v22 }
 0xcb0   : > { %v3445_v56 = vcombine.low %v3420_v51, %v3428_v52  ;;  %v3461_v57 = vcombine.low %v3436_v53, %v3444_v54  ;;  %v3446_v58 = vcombine.high %v3420_v51, %v3428_v52  ;;  %v3462_v59 = vcombine.high %v3436_v53, %v3444_v54 }
 0xcb2   : > { %v3453_v63 = vrot.slane %v3445_v56, %v6309_v61  ;;  %v3469_v1 = vrot.slane %v3461_v57, %v6309_v61  ;;  %v3460_v2 = vrot.slane %v3446_v58, %v6309_v61  ;;  %v3476_v3 = vrot.slane %v3462_v59, %v6309_v61 }
 0xcb4   : > { %v3477_v5 = vcombine.low %v3453_v63, %v3469_v1  ;;  %v3478_v6 = vcombine.high %v3453_v63, %v3469_v1  ;;  %v3479_v13 = vcombine.low %v3460_v2, %v3476_v3  ;;  %v3480_v14 = vcombine.high %v3460_v2, %v3476_v3 }
 0xcb6   : > { %5134 = vmatpush3.msra.mxu0 %v3477_v5  ;;  %5139 = vmatpush3.msra.mxu1 %v3478_v6  ;;  %v4898_v6 = vld [vmem:[%s6802_s10] ss:$0 sm:$0xff]  ;;  %s5674_s10 = sshll.u32 %s5812_s3, 4  ;;  %s5675_s10 = int_to_ptr.vmem [resolvable:$false] %s5674_s10 }
 0xcb7   : > { %5136 = vmatmul.mubr.msk.f32.vlgmr.msra.gmra.mxu0 %vm1873_vm4, %v3829_v7  ;;  %5141 = vmatmul.mubr.msk.f32.vlgmr.msra.gmra.mxu1 %vm1873_vm4, %v3830_v8 }
 0xcb8   : > { %5143 = vmatprep.subr.mxu0 %v5802_v9  ;;  %5148 = vmatprep.subr.mxu1 %v5802_v9 }
 0xcb9   : > { %5144 = vmatpush3.msra.mxu0 %v3479_v13  ;;  %5149 = vmatpush3.msra.mxu1 %v3480_v14 }
 0xcba   : > { %5145 = vmatprep.mubr.msk.f32.mxu0 %vm5803_vm1, %v5802_v9  ;;  %5150 = vmatprep.mubr.msk.f32.mxu1 %vm5803_vm1, %v5802_v9 }
 0xcbb   : > { %5146 = vmatmul.mubr.msk.f32.vlgmr.msra.gmra.mxu0 %vm1873_vm4, %v3831_v16  ;;  %5151 = vmatmul.mubr.msk.f32.vlgmr.msra.gmra.mxu1 %vm1873_vm4, %v3832_v11 }
 0xcbc   : > { %5153 = vmatprep.subr.mxu0 %v5802_v9  ;;  %5161 = vmatprep.mubr.msk.f32.mxu0 %vm5803_vm1, %v5802_v9 }
 0xcbd   : > { %5164 = vmatprep.subr.mxu1 %v5802_v9  ;;  %5172 = vmatprep.mubr.msk.f32.mxu1 %vm5803_vm1, %v5802_v9 }
 0xcbe   : > { %5154 = vmatpush3.msra.mxu0 %v4279_v12 }
 0xcbf   : > { %5155 = vmatprep.subr.mxu0 %v5802_v9 }
 0xcc0   : > { %5156 = vmatpush3.msra.mxu0 %v4278_v36 }
 0xcc1   : > { %5157 = vmatprep.subr.mxu0 %v5802_v9 }
 0xcc2   : > { %5158 = vmatpush3.msra.mxu0 %v4277_v37  ;;  %v4901_v37 = vld [vmem:[%s6805_s25] ss:$0 sm:$0xff] }
 0xcc3   : > { %5159 = vmatprep.subr.mxu0 %v5802_v9 }
 0xcc4   : > { %5160 = vmatpush3.msra.mxu0 %v4276_v46 }
 0xcc5   : > { %5175 = vmatprep.subr.mxu0 %v5802_v9 }
 0xd77   : > { %v3902_v15 = vpop.f32.mrf.mxu0  ;;  %v3975_v17 = vpop.f32.mrf.mxu1 }
 0xd79   : > { %v5137_v18 = vpop.f32.mrf.mxu0  ;;  %v5142_v19 = vpop.f32.mrf.mxu1 }
 0xd7a   : > { %v4401_v18 = vld [vmem:[#allocation17 + $0x18] sm:$0xff]  ;;  %v4400_v19 = vld [vmem:[#allocation17 + $0x10] sm:$0xff] }
 0xd7b   : > { %v4048_v20 = vpop.f32.mrf.mxu0  ;;  %v4121_v21 = vpop.f32.mrf.mxu1  ;;  %5165 = vmatpush3.msra.mxu1 %v4401_v18 }
 0xd7c   : > { %v4125_v22 = vcombine.low %v3902_v15, %v4048_v20  ;;  %v4126_v23 = vcombine.high %v3902_v15, %v4048_v20  ;;  %v4141_v24 = vcombine.low %v3975_v17, %v4121_v21  ;;  %v4142_v25 = vcombine.high %v3975_v17, %v4121_v21  ;;  %5166 = vmatprep.subr.mxu1 %v5802_v9  ;;  %v4398_v20 = vld [vmem:[#allocation17] sm:$0xff]  ;;  %v4490_v21 = vld [vmem:[%s6803_s27 + $0x38] sm:$0xff] }
 0xd7d   : > { %v5147_v26 = vpop.f32.mrf.mxu0  ;;  %v5152_v47 = vpop.f32.mrf.mxu1  ;;  %5167 = vmatpush3.msra.mxu1 %v4400_v19 }
 0xd7e   : > { %v4133_v27 = vrot.slane %v4125_v22, %v6307_v55  ;;  %v4140_v28 = vrot.slane %v4126_v23, %v6307_v55  ;;  %v4149_v29 = vrot.slane %v4141_v24, %v6307_v55  ;;  %v4156_v30 = vrot.slane %v4142_v25, %v6307_v55  ;;  %5168 = vmatprep.subr.mxu1 %v5802_v9  ;;  %v4489_v22 = vld [vmem:[%s6803_s27 + $0x30] sm:$0xff]  ;;  %v4488_v23 = vld [vmem:[%s6803_s27 + $0x28] sm:$0xff]  ;;  %v4487_v24 = vld [vmem:[%s6803_s27 + $0x20] sm:$0xff] }
 0xd7f   : > { %v4486_v25 = vld [vmem:[%s6803_s27 + $0x18] sm:$0xff] }
 0xd80   : > { %v4157_v31 = vcombine.low %v4133_v27, %v4149_v29  ;;  %v4158_v32 = vcombine.high %v4133_v27, %v4149_v29  ;;  %v4173_v33 = vcombine.low %v4140_v28, %v4156_v30  ;;  %v4174_v34 = vcombine.high %v4140_v28, %v4156_v30 }
 0xd82   : > { %v4165_v38 = vrot.slane %v4157_v31, %v6309_v61  ;;  %v4172_v39 = vrot.slane %v4158_v32, %v6309_v61  ;;  %v4181_v40 = vrot.slane %v4173_v33, %v6309_v61  ;;  %v4188_v41 = vrot.slane %v4174_v34, %v6309_v61  ;;  %v4900_v34 = vld [vmem:[%s6804_s20] ss:$0 sm:$0xff] }
 0xd84   : > { %v4193_v43 = vcombine.low %v4165_v38, %v4172_v39  ;;  %v4896_v44 = vcombine.high %v4165_v38, %v4172_v39  ;;  %v4209_v45 = vcombine.low %v4181_v40, %v4188_v41  ;;  %v4897_v35 = vcombine.high %v4181_v40, %v4188_v41  ;;  %v4485_v40 = vld [vmem:[%s6803_s27 + $0x10] sm:$0xff]  ;;  %v4484_v41 = vld [vmem:[%s6803_s27 + $0x8] sm:$0xff] }
 0xd86   : > { %v4200_v0 = vrot.slane %v4193_v43, %v6307_v55  ;;  %v4208_v48 = vrot.slane %v4896_v44, %v6307_v55  ;;  %v4216_v49 = vrot.slane %v4209_v45, %v6307_v55  ;;  %v4224_v50 = vrot.slane %v4897_v35, %v6307_v55  ;;  %v4483_v43 = vld [vmem:[%s6803_s27] sm:$0xff] }
 0xd87   : > { %v4902_v44 = vld [vmem:[%s6806_s8] ss:$0 sm:$0xff] }
 0xd88   : > { %v4226_v51 = vcombine.high %v4200_v0, %v4208_v48  ;;  %v4242_v52 = vcombine.high %v4216_v49, %v4224_v50  ;;  %v4225_v53 = vcombine.low %v4200_v0, %v4208_v48  ;;  %v4241_v54 = vcombine.low %v4216_v49, %v4224_v50  ;;  %v4904_v48 = vld [vmem:[%s6807_s2] ss:$0 sm:$0xff] }
 0xd8a   : > { %v4240_v56 = vrot.slane %v4226_v51, %v6309_v61  ;;  %v4256_v57 = vrot.slane %v4242_v52, %v6309_v61  ;;  %v4233_v58 = vrot.slane %v4225_v53, %v6309_v61  ;;  %v4249_v59 = vrot.slane %v4241_v54, %v6309_v61 }
 0xd8c   : > { %v4259_v60 = vcombine.low %v4240_v56, %v4256_v57  ;;  %v4258_v62 = vcombine.high %v4233_v58, %v4249_v59  ;;  %v4257_v63 = vcombine.low %v4233_v58, %v4249_v59  ;;  %v4260_v55 = vcombine.high %v4240_v56, %v4256_v57 }
 0xd8e   : > { %4266 = vrot.lane.b32.xlu1 %v4259_v60, %s5809_s23  ;;  %4262 = vrot.lane.b32.xlu0 %v4258_v62, %s5810_s30  ;;  %s6809_s23 = smov %s6808_s15  ;;  %s4907_s30 = sshll.u32 %s5994_s26, 7 }
 0xd8f   : > { %s4586_s9 = scalar_lea.hbm %s6808_s15, %s4907_s30  ;;  %s5676_s26 = scalar_lea.vmem %s5675_s10, 256 }
 0xd92   : > { %4270 = vrot.lane.b32.xlu0 %v4260_v55, %s5811_s28  ;;  %s1140_s28 = scalar_lea.vmem [#allocation19], %s6214_s7 }
 0xd93   : > { %s4588_s0 = sshll.u32 %s1140_s28, 4  ;;  %s4589_s0 = int_to_ptr.vmem [resolvable:$true] %s4588_s0 }
 0xd94   : > { %s5670_s11 = scalar_lea.vmem %s4589_s0, 128  ;;  %p5677_p11 = scmp.lt.s32.totalorder %s4589_s0, %s5675_s10 }
 0xd95   : > { %p5671_p13 = scmp.ne.s32.totalorder %s4589_s0, %s5670_s11  ;;  %p5678_p10 = scmp.lt.s32.totalorder %s5676_s26, %s5670_s11 }
 0xd97   : > { %p5672_p9 = pnand %p5671_p13, %p6811_p1  ;;  %p5679_p12 = por %p5678_p10, %p5677_p11 }
 0xd99   : > { %p5673_p0 = pneg %p5672_p9 }
 0xd9b   : > { %p5680_p5 = pnand %p5679_p12, %p5673_p0 }
 0xe00   : > { %v4263_v1 = vpop.permute.xlu0 %4262  ;;  %v4267_v2 = vpop.permute.xlu1 %4266 }
 0xe01   : > { %v4273_v3 = vsel %vm1873_vm4, %v4257_v63, %v4263_v1 }
 0xe02   : > { %v4274_v5 = vsel %vm2667_vm6, %v4273_v3, %v4267_v2 }
 0xe04   : > { %v4271_v4 = vpop.permute.xlu0 %4270 }
 0xe05   : > { %v4275_v61 = vsel %vm2669_vm7, %v4274_v5, %v4271_v4 }
 0xe06   : > { %5162 = vmatmul.mubr.msk.f32.vlgmr.msra.gmra.mxu0 %vm1149_vm0, %v4275_v61 }
 0xe07   : > { %5191 = vmatprep.mubr.msk.f32.mxu0 %vm5803_vm1, %v5802_v9  ;;  %5176 = vmatpush3.msra.mxu0 %v4490_v21 }
 0xe08   : > { %5177 = vmatprep.subr.mxu0 %v5802_v9 }
 0xe09   : > { %5178 = vmatpush3.msra.mxu0 %v4489_v22 }
 0xe0a   : > { %5179 = vmatprep.subr.mxu0 %v5802_v9 }
 0xe0b   : > { %5180 = vmatpush3.msra.mxu0 %v4488_v23 }
 0xe0c   : > { %5181 = vmatprep.subr.mxu0 %v5802_v9 }
 0xe0d   : > { %5182 = vmatpush3.msra.mxu0 %v4487_v24 }
 0xe0e   : > { %5183 = vmatprep.subr.mxu0 %v5802_v9 }
 0xe0f   : > { %5184 = vmatpush3.msra.mxu0 %v4486_v25 }
 0xe10   : > { %5185 = vmatprep.subr.mxu0 %v5802_v9 }
 0xe11   : > { %5186 = vmatpush3.msra.mxu0 %v4485_v40 }
 0xe12   : > { %5187 = vmatprep.subr.mxu0 %v5802_v9 }
 0xe13   : > { %5188 = vmatpush3.msra.mxu0 %v4484_v41 }
 0xe14   : > { %5189 = vmatprep.subr.mxu0 %v5802_v9 }
 0xe15   : > { %5190 = vmatpush3.msra.mxu0 %v4483_v43 }
 0xec6   : > { %v4356_v7 = vpop.f32.mrf.mxu0 }
 0xec7   : > { %v4357_v8 = vadd.f32 %v4898_v6, %v4356_v7 }
 0xec8   : > { %v5163_v10 = vpop.f32.mrf.mxu0 }
 0xec9   : > { %v6642_v13 = vadd.f32 %v4357_v8, %v6450_v42  ;;  %v4399_v42 = vld [vmem:[#allocation17 + $0x8] sm:$0xff] }
 0xeca   : > { %5169 = vmatpush3.msra.mxu1 %v4399_v42 }
 0xecb   : > { %v4361_v14 = vsel %vm1149_vm0, %v6642_v13, 0.0  ;;  %5170 = vmatprep.subr.mxu1 %v5802_v9 }
 0xecc   : > { %4362 = vadd.xlane.f32.xlu1 %v4361_v14  ;;  %5171 = vmatpush3.msra.mxu1 %v4398_v20 }
 0xf55   : > { %v4363_v16 = vpop.xlane.xlu1 %4362 }
 0xf56   : > { %v4364_v11 = vmul.f32 0.03125, %v4363_v16 }
 0xf58   : > { %v4365_v12 = vsub.f32 %v6642_v13, %v4364_v11 }
 0xf5a   : > { %v4366_v15 = vmul.f32 %v4365_v12, %v4365_v12 }
 0xf5c   : > { %v4367_v17 = vsel %vm1149_vm0, %v4366_v15, 0.0 }
 0xf5d   : > { %4368 = vadd.xlane.f32.xlu0 %v4367_v17 }
 0xfe6   : > { %v4369_v26 = vpop.xlane.xlu0 %4368 }
 0xfe7   : > { %v4370_v47 = vmul.f32 0.032258064, %v4369_v26 }
 0xfe9   : > { %5398 = vrsqrt.f32 %v4370_v47  ;;  %vm4373_vm11 = vcmp.eq.f32.partialorder %v4370_v47, inf  ;;  %v4376_v29 = vand.u32 2147483648, %v4370_v47  ;;  %vm4375_vm12 = vcmp.eq.f32.partialorder %v4370_v47, 0.0 }
 0xff6   : > { %v5399_v27 = vpop.eup %5398 }
 0xff7   : > { %v4372_v28 = vmul.f32 %v5399_v27, %v4370_v47 }
 0xff9   : > { %v4374_v30 = vsel %vm4373_vm11, %v4370_v47, %v4372_v28 }
 0xffa   : > { %v4377_v31 = vsel %vm4375_vm12, %v4376_v29, %v4374_v30 }
 0xffb   : > { %v4378_v32 = vadd.f32 1e-06, %v4377_v31 }
 0xffd   : > { %5400 = vrcp.f32 %v4378_v32 }
0x100a   : > { %v5401_v33 = vpop.eup %5400 }
0x100b   : > { %v4382_v36 = vmul.f32 %v5401_v33, %v4365_v12 }
0x100d   : > { %v4389_v38 = vmul.f32 %v4900_v34, %v4382_v36 }
0x100f   : > { %v4397_v39 = vadd.f32 %v4901_v37, %v4389_v38 }
0x1011   : > { %5173 = vmatmul.mubr.msk.f32.vlgmr.msra.gmra.mxu1 %vm1149_vm0, %v4397_v39 }
0x10d1   : > { %v4478_v45 = vpop.f32.mrf.mxu1 }
0x10d2   : > { %v4479_v35 = vadd.f32 %v4902_v44, %v4478_v45 }
0x10d3   : > { %v5174_v46 = vpop.f32.mrf.mxu1 }
0x10d4   : > { %v4482_v0 = vmax.f32 %v4479_v35, 0.0 }
0x10d6   : > { %5192 = vmatmul.mubr.msk.f32.vlgmr.msra.gmra.mxu0 %vm4498_vm13, %v4482_v0 }
0x1196   : > { %v4568_v49 = vpop.f32.mrf.mxu0 }
0x1197   : > { %v4569_v50 = vadd.f32 %v4904_v48, %v4568_v49 }
0x1198   : > { %v5193_v51 = vpop.f32.mrf.mxu0 }
0x1199   : > { %v4572_v9 = vadd.f32 %v4569_v50, %v6642_v13 }
0x119b   : > { %4573 = vst.msk [vmem:[%s1140_s28] sm:$0xff] %vm1149_vm0, %v4572_v9 }
0x119c   : > { %5683 = shalt.err (!%p5680_p5)
}
0x119d   : > { %s5684_s7 = scalar_lea.hbm %s4586_s9, 128  ;;  %s5688_s1 = scalar_lea.hbm %s6809_s23, 256 }
0x119e   : > { %p5685_p4 = scmp.ne.s32.totalorder %s4586_s9, %s5684_s7  ;;  %p5689_p8 = scmp.lt.s32.totalorder %s4586_s9, %s6809_s23 }
0x119f   : > { %p5690_p2 = scmp.lt.s32.totalorder %s5688_s1, %s5684_s7 }
0x11a0   : > { %p5686_p6 = pnand %p5685_p4, %p6811_p1 }
0x11a1   : > { %p5691_p3 = por %p5690_p2, %p5689_p8 }
0x11a2   : > { %p5687_p7 = pneg %p5686_p6 }
0x11a4   : > { %p5692_p13 = pnand %p5691_p3, %p5687_p7 }
0x11a6   : > { %5695 = shalt.err (!%p5692_p13)
}
0x11a7   : > { %5226 = dma.vmem_to_hbm [thread:$0]  (%p6811_p1), %s4589_s0, 128, %s4586_s9, %s4575_s4  }
0x11a8 PF: > { %s6812_s20 = sld [smem:[#allocation51_spill]]  ;;  %p6815_p0 = scmp.ge.s32.totalorder %s5758_s22, 2 }
0x11a9   : > { %s6813_s25 = sld [smem:[#allocation55_spill]] }
0x11ae   : > { %s4600_s8 = sand.u32 1, %s6812_s20  }
0x11af   : > { %p6814_p9 = scmp.ne.s32.totalorder %s6813_s25, 0  ;;  %s4601_s2 = scalar_lea.sflag [#allocation4], %s4600_s8 }
0x11b1   : > { %p5261_p11 = pnand %p6815_p0, %p6814_p9 }
0x11b3   : > { %p5262_p10 = pneg %p5261_p11 }
0x11b5   : > { %5741 = dma.done.wait (%p5262_p10), %s4601_s2, 128  }
0x11b6   : > { %5743 = vsyncadd (%p5262_p10), %s4601_s2, 4294967168  ;;  %s6816_s22 = sld [smem:[#allocation52_spill]]  ;;  %s6818_s15 = smov %s5750_s16 }
0x11b7   : > { %s6817_s30 = sld [smem:[#allocation53_spill]]  ;;  %s6819_s16 = smov %s5754_s18 }
0x11bc   : > { %p83_p12 = scmp.ge.s32.totalorder %s6816_s22, 4  }
0x11bd   : > { %s6820_s18 = smov %s6817_s30 }
0x11be   :  { %85 = sbr.rel (!%p83_p12) target bundleno = 71 (0x47), region = 276 }
0x11c3   :  { %4606 = vsyncpa [#allocation3], 1 }
0x11c4   :  { %4608 = vsyncpa [#allocation3 + $0x1], 1 }
0x11c5   :  { %4609 = vsyncpa [#allocation6], 1 }
0x11c6   :  { %4611 = vsyncpa [#allocation6 + $0x1], 1 }
0x11c7   :  { %4612 = vsyncpa [#allocation9], 1 }
0x11c8   :  { %4614 = vsyncpa [#allocation9 + $0x1], 1 }
0x11c9   :  { %4615 = vsyncpa [#allocation12], 1 }
0x11ca   :  { %4616 = vsyncpa [#allocation15], 1 }
0x11cb   :  { %4617 = vsyncpa [#allocation18], 1 }
0x11cc   :  { %4618 = vsyncpa [#allocation4], 1 }
0x11cd   :  { %4620 = vsyncpa [#allocation4 + $0x1], 1 }

</bundles_post_ra>
